<compile_context>
chip_gen: v7x
topology: tpu7x:2x2x1
jax: 0.10.0
libtpu: 0.0.40
codegen_flags: <defaults>
</compile_context>

<pallas_src>
import functools

import jax
import jax.numpy as jnp
from jax import lax
from jax.experimental import pallas as pl
from jax.experimental.pallas import tpu as pltpu


_VMEM_SPEC = pl.BlockSpec(memory_space=pltpu.MemorySpace.VMEM)


def _round_up(x, m):
    return (x + m - 1) // m * m


# --------------------------------------------------------------------------------------
# Fused Pallas kernel: all LSTM layers + fc + sigmoid
# --------------------------------------------------------------------------------------
def _fused_sentiment_kernel(*refs, n_layers, hidden_dim, seq_len, batch):
    """Refs (in order):
      x_ref    : (T*B, D_pad)   bf16   layer-0 input (time-major, flattened, padded)
      mask_ref : (T*B, 1)       f32    1.0 where t < length[b] else 0.0
      h0_ref   : (L, B, H)      f32
      c0_ref   : (L, B, H)      f32
      per layer l: w_ih_l (D_in,4H) bf16, w_hh_l (H,4H) bf16, b_l (1,4H) f32
      fc_w_ref : (H, O_pad)     bf16
      fc_b_ref : (1, O_pad)     f32
      out_ref  : (T*B, O_pad)   f32    (output)
      seq_ref  : (T*B, H)       f32    (VMEM scratch: inter-layer activations)
    """
    H = hidden_dim
    T = seq_len
    B = batch

    x_ref, mask_ref, h0_ref, c0_ref = refs[:4]
    layer_refs = refs[4:4 + 3 * n_layers]
    fc_w_ref, fc_b_ref, out_ref, seq_ref = refs[4 + 3 * n_layers:]

    mask = mask_ref[...]                                   # (T*B, 1) f32

    # lane-mask selecting the "g" (cell candidate) gate block -> tanh; rest -> sigmoid.
    lane = lax.broadcasted_iota(jnp.int32, (B, 4 * H), 1)
    is_g = (lane >= 2 * H) & (lane < 3 * H)

    for l in range(n_layers):
        w_ih = layer_refs[3 * l][...]                      # (D_in, 4H) bf16
        w_hh = layer_refs[3 * l + 1][...]                  # (H, 4H)    bf16
        b = layer_refs[3 * l + 2][...]                     # (1, 4H)    f32

        if l == 0:
            x_in = x_ref[...]                              # (T*B, D_pad) bf16
        else:
            x_in = seq_ref[...].astype(w_ih.dtype)         # (T*B, H) -> bf16

        # Hoisted input projection: one big MXU matmul for the whole sequence.
        pre = jnp.dot(x_in, w_ih, preferred_element_type=jnp.float32)  # (T*B, 4H) f32

        h = h0_ref[l]                                      # (B, H) f32
        c = c0_ref[l]                                      # (B, H) f32

        # Fully unrolled recurrence (T static & small); only h @ W_hh is serial.
        for t in range(T):
            gates = (pre[t * B:(t + 1) * B]
                     + jnp.dot(h.astype(w_hh.dtype), w_hh,
                               preferred_element_type=jnp.float32)
                     + b)                                  # (B, 4H) f32
            # full-width EUP: one sigmoid + one tanh over the whole 4H vreg, then select
            act = jnp.where(is_g, jnp.tanh(gates), jax.nn.sigmoid(gates))
            i_g = act[:, 0 * H:1 * H]
            f_g = act[:, 1 * H:2 * H]
            g_g = act[:, 2 * H:3 * H]
            o_g = act[:, 3 * H:4 * H]

            c_new = f_g * c + i_g * g_g
            h_new = o_g * jnp.tanh(c_new)

            valid = mask[t * B:(t + 1) * B] > 0.0          # (B, 1)
            # pad_packed_sequence: output is zero at padded timesteps
            seq_ref[t * B:(t + 1) * B, :] = jnp.where(valid, h_new, 0.0)
            # packed-sequence semantics: state freezes past the sequence end
            h = jnp.where(valid, h_new, h)
            c = jnp.where(valid, c_new, c)

    # fc + sigmoid on the final hidden states (lane-padded output -> dense stores)
    y = (jnp.dot(seq_ref[...].astype(fc_w_ref.dtype), fc_w_ref[...],
                 preferred_element_type=jnp.float32)
         + fc_b_ref[...])                                  # (T*B, O_pad) f32
    out_ref[...] = jax.nn.sigmoid(y).astype(out_ref.dtype)


# --------------------------------------------------------------------------------------
# Model: parameter init + forward (glue in plain JAX, hot path in one Pallas kernel)
# --------------------------------------------------------------------------------------
def init_params(key, dict_size, embedding_dim, hidden_dim, n_layers, output_size):
    keys = jax.random.split(key, 4 * n_layers + 3)
    k_emb, k_fc_w, k_fc_b = keys[0], keys[1], keys[2]
    layer_keys = keys[3:]

    emb = 0.02 * jax.random.normal(k_emb, (dict_size, embedding_dim), jnp.float32)
    emb = emb.at[0].set(0.0)  # padding_idx=0

    scale = 1.0 / jnp.sqrt(hidden_dim)
    layers = []
    d_in = embedding_dim + 1
    for l in range(n_layers):
        k0, k1, k2, k3 = layer_keys[4 * l:4 * l + 4]
        w_ih = jax.random.uniform(k0, (d_in, 4 * hidden_dim), jnp.float32, -scale, scale)
        w_hh = jax.random.uniform(k1, (hidden_dim, 4 * hidden_dim), jnp.float32, -scale, scale)
        b_ih = jax.random.uniform(k2, (4 * hidden_dim,), jnp.float32, -scale, scale)
        b_hh = jax.random.uniform(k3, (4 * hidden_dim,), jnp.float32, -scale, scale)
        layers.append((w_ih, w_hh, (b_ih + b_hh).reshape(1, 4 * hidden_dim)))
        d_in = hidden_dim

    fc_w = jax.random.uniform(k_fc_w, (hidden_dim, output_size), jnp.float32, -scale, scale)
    fc_b = jax.random.uniform(k_fc_b, (1, output_size), jnp.float32, -scale, scale)
    return {"embedding": emb, "layers": layers, "fc_w": fc_w, "fc_b": fc_b}


def init_hidden(key, n_layers, batch_size, hidden_dim):
    kh, kc = jax.random.split(key)
    h = jax.random.normal(kh, (n_layers, batch_size, hidden_dim), jnp.float32)
    c = jax.random.normal(kc, (n_layers, batch_size, hidden_dim), jnp.float32)
    return h, c


def sentiment_forward(params, hidden, x, s_lengths, hidden_dim, output_size):
    """x: (B, T, 2) -- [:,:,0] token ids, [:,:,1] keyword flag.
    s_lengths: (B,) int lengths of the unpadded sequences.
    Returns: (B, T, output_size) float32, sigmoid-activated."""
    B, T, _ = x.shape
    H = hidden_dim
    n_layers = len(params["layers"])

    tokens = x[:, :, 0].astype(jnp.int32)
    keyword = x[:, :, 1].astype(jnp.float32)

    # embedding lookup (+ keyword feature)   -> (B, T, E+1)
    emb = jnp.take(params["embedding"], tokens, axis=0)
    feat = jnp.concatenate([emb, keyword[..., None]], axis=-1)
    d_in = feat.shape[-1]

    # pad batch to sublane multiple, features / fc output to lane multiples
    b_pad = _round_up(B, 8)
    d_pad = _round_up(d_in, 128)
    o_pad = _round_up(output_size, 128)

    # time-major, flattened (T*B_pad, D_pad), bf16 MXU operand
    x_tm = jnp.transpose(feat, (1, 0, 2))                                  # (T, B, D)
    x_tm = jnp.pad(x_tm, ((0, 0), (0, b_pad - B), (0, d_pad - d_in)))
    x_flat = x_tm.reshape(T * b_pad, d_pad).astype(jnp.bfloat16)

    lens = jnp.pad(s_lengths.astype(jnp.int32), (0, b_pad - B))            # pad rows -> len 0
    mask_tm = (jnp.arange(T)[:, None] < lens[None, :]).astype(jnp.float32)  # (T, B_pad)
    mask_flat = mask_tm.reshape(T * b_pad, 1)

    h0, c0 = hidden
    h0 = jnp.pad(h0.astype(jnp.float32), ((0, 0), (0, b_pad - B), (0, 0)))
    c0 = jnp.pad(c0.astype(jnp.float32), ((0, 0), (0, b_pad - B), (0, 0)))

    layer_args = []
    for l, (w_ih, w_hh, b) in enumerate(params["layers"]):
        if l == 0:
            w_ih = jnp.pad(w_ih, ((0, d_pad - w_ih.shape[0]), (0, 0)))
        layer_args += [w_ih.astype(jnp.bfloat16),
                       w_hh.astype(jnp.bfloat16),
                       b.astype(jnp.float32)]

    fc_w = jnp.pad(params["fc_w"], ((0, 0), (0, o_pad - output_size))).astype(jnp.bfloat16)
    fc_b = jnp.pad(params["fc_b"], ((0, 0), (0, o_pad - output_size))).astype(jnp.float32)

    kernel = functools.partial(_fused_sentiment_kernel,
                               n_layers=n_layers, hidden_dim=H,
                               seq_len=T, batch=b_pad)
    n_inputs = 4 + 3 * n_layers + 2
    out_flat = pl.pallas_call(
        kernel,
        out_shape=jax.ShapeDtypeStruct((T * b_pad, o_pad), jnp.float32),
        in_specs=[_VMEM_SPEC] * n_inputs,
        out_specs=_VMEM_SPEC,
        scratch_shapes=[pltpu.VMEM((T * b_pad, H), jnp.float32)],
    )(x_flat, mask_flat, h0, c0, *layer_args, fc_w, fc_b)

    # (T*B_pad, O_pad) -> (B, T, output_size)
    out_tm = out_flat.reshape(T, b_pad, o_pad)
    return jnp.transpose(out_tm[:, :B, :output_size], (1, 0, 2))


# --------------------------------------------------------------------------------------
if __name__ == "__main__":
    # small shapes consistent with the module
    DICT_SIZE = 50
    EMBED_DIM = 32
    HIDDEN_DIM = 32
    N_LAYERS = 2
    OUTPUT_SIZE = 1
    B, T = 2, 8

    key = jax.random.PRNGKey(0)
    k_par, k_hid, k_tok, k_kw = jax.random.split(key, 4)

    params = init_params(k_par, DICT_SIZE, EMBED_DIM, HIDDEN_DIM, N_LAYERS, OUTPUT_SIZE)
    hidden = init_hidden(k_hid, N_LAYERS, B, HIDDEN_DIM)

    s_lengths = jnp.array([T, 5], dtype=jnp.int32)  # sorted descending, like pack_padded
    tokens = jax.random.randint(k_tok, (B, T), 1, DICT_SIZE, dtype=jnp.int32)
    pad_mask = jnp.arange(T)[None, :] < s_lengths[:, None]
    tokens = jnp.where(pad_mask, tokens, 0)  # pad with token 0 (padding_idx)
    keyword = jax.random.bernoulli(k_kw, 0.3, (B, T)).astype(jnp.float32) * pad_mask

    x = jnp.stack([tokens.astype(jnp.float32), keyword], axis=-1)  # (B, T, 2)

    y = sentiment_forward(params, hidden, x, s_lengths, HIDDEN_DIM, OUTPUT_SIZE)
    y = jax.block_until_ready(y)

    assert y.shape == (B, T, OUTPUT_SIZE)
    assert bool(jnp.all(jnp.isfinite(y)))
    assert bool(jnp.all((y >= 0.0) & (y <= 1.0)))  # sigmoid output
    print("KERNEL_OK")
</pallas_src>

<mosaic_0001>
module attributes {stable_mosaic.version = 11 : i64} {
  func.func @_fused_sentiment_kernel(%arg0: memref<64x128xbf16, #tpu.memory_space<vmem>>, %arg1: memref<64x1xf32, #tpu.memory_space<vmem>>, %arg2: memref<2x8x32xf32, #tpu.memory_space<vmem>>, %arg3: memref<2x8x32xf32, #tpu.memory_space<vmem>>, %arg4: memref<128x128xbf16, #tpu.memory_space<vmem>>, %arg5: memref<32x128xbf16, #tpu.memory_space<vmem>>, %arg6: memref<1x128xf32, #tpu.memory_space<vmem>>, %arg7: memref<32x128xbf16, #tpu.memory_space<vmem>>, %arg8: memref<32x128xbf16, #tpu.memory_space<vmem>>, %arg9: memref<1x128xf32, #tpu.memory_space<vmem>>, %arg10: memref<32x128xbf16, #tpu.memory_space<vmem>>, %arg11: memref<1x128xf32, #tpu.memory_space<vmem>>, %arg12: memref<64x128xf32, #tpu.memory_space<vmem>>, %arg13: memref<64x32xf32, #tpu.memory_space<vmem>>) attributes {dimension_semantics = [], scalar_prefetch = 0 : i64, scratch_operands = 1 : i64, tpu.core_type = #tpu.core_type<tc>} {
    %c0 = arith.constant 0 : index
    %c0_0 = arith.constant 0 : index
    %0 = vector.load %arg1[%c0, %c0_0] : memref<64x1xf32, #tpu.memory_space<vmem>>, vector<64x1xf32>
    %1 = tpu.iota {dimensions = array<i32: 1>} : vector<8x128xi32>
    %c64_i32 = arith.constant 64 : i32
    %2 = vector.broadcast %c64_i32 : i32 to vector<8x128xi32>
    %3 = arith.cmpi sge, %1, %2 : vector<8x128xi32>
    %c96_i32 = arith.constant 96 : i32
    %4 = vector.broadcast %c96_i32 : i32 to vector<8x128xi32>
    %5 = arith.cmpi slt, %1, %4 : vector<8x128xi32>
    %6 = arith.andi %3, %5 : vector<8x128xi1>
    %c0_1 = arith.constant 0 : index
    %c0_2 = arith.constant 0 : index
    %7 = vector.load %arg4[%c0_1, %c0_2] : memref<128x128xbf16, #tpu.memory_space<vmem>>, vector<128x128xbf16>
    %c0_3 = arith.constant 0 : index
    %c0_4 = arith.constant 0 : index
    %8 = vector.load %arg5[%c0_3, %c0_4] : memref<32x128xbf16, #tpu.memory_space<vmem>>, vector<32x128xbf16>
    %c0_5 = arith.constant 0 : index
    %c0_6 = arith.constant 0 : index
    %9 = vector.load %arg6[%c0_5, %c0_6] : memref<1x128xf32, #tpu.memory_space<vmem>>, vector<1x128xf32>
    %c0_7 = arith.constant 0 : index
    %c0_8 = arith.constant 0 : index
    %10 = vector.load %arg0[%c0_7, %c0_8] : memref<64x128xbf16, #tpu.memory_space<vmem>>, vector<64x128xbf16>
    %cst = arith.constant dense<0.000000e+00> : vector<64x128xf32>
    %11 = tpu.matmul %10, %7, %cst {dimension_numbers = #tpu.dot_dimension_numbers<[1], [0], [0], [1], [0, 0, 1, 1], [], []>} : vector<64x128xbf16>, vector<128x128xbf16>, vector<64x128xf32> -> vector<64x128xf32>
    %c0_9 = arith.constant 0 : index
    %c0_10 = arith.constant 0 : index
    %c0_11 = arith.constant 0 : index
    %12 = vector.load %arg2[%c0_9, %c0_10, %c0_11] : memref<2x8x32xf32, #tpu.memory_space<vmem>>, vector<1x8x32xf32>
    %13 = vector.shape_cast %12 : vector<1x8x32xf32> to vector<8x32xf32>
    %c0_12 = arith.constant 0 : index
    %c0_13 = arith.constant 0 : index
    %c0_14 = arith.constant 0 : index
    %14 = vector.load %arg3[%c0_12, %c0_13, %c0_14] : memref<2x8x32xf32, #tpu.memory_space<vmem>>, vector<1x8x32xf32>
    %15 = vector.shape_cast %14 : vector<1x8x32xf32> to vector<8x32xf32>
    %16 = vector.extract_strided_slice %11 {offsets = [0, 0], sizes = [8, 128], strides = [1, 1]} : vector<64x128xf32> to vector<8x128xf32>
    %17 = arith.truncf %13 : vector<8x32xf32> to vector<8x32xbf16>
    %cst_15 = arith.constant dense<0.000000e+00> : vector<8x128xf32>
    %18 = tpu.matmul %17, %8, %cst_15 {dimension_numbers = #tpu.dot_dimension_numbers<[1], [0], [0], [1], [0, 0, 1, 1], [], []>} : vector<8x32xbf16>, vector<32x128xbf16>, vector<8x128xf32> -> vector<8x128xf32>
    %19 = arith.addf %16, %18 : vector<8x128xf32>
    %20 = vector.broadcast %9 : vector<1x128xf32> to vector<8x128xf32>
    %21 = arith.addf %19, %20 : vector<8x128xf32>
    %22 = math.tanh %21 : vector<8x128xf32>
    %23 = arith.negf %21 : vector<8x128xf32>
    %24 = math.exp %23 : vector<8x128xf32>
    %cst_16 = arith.constant 1.000000e+00 : f32
    %25 = vector.broadcast %cst_16 : f32 to vector<8x128xf32>
    %26 = arith.addf %25, %24 : vector<8x128xf32>
    %27 = arith.divf %25, %26 : vector<8x128xf32>
    %28 = arith.select %6, %22, %27 : vector<8x128xi1>, vector<8x128xf32>
    %29 = vector.extract_strided_slice %28 {offsets = [0, 0], sizes = [8, 32], strides = [1, 1]} : vector<8x128xf32> to vector<8x32xf32>
    %30 = vector.extract_strided_slice %28 {offsets = [0, 32], sizes = [8, 32], strides = [1, 1]} : vector<8x128xf32> to vector<8x32xf32>
    %31 = vector.extract_strided_slice %28 {offsets = [0, 64], sizes = [8, 32], strides = [1, 1]} : vector<8x128xf32> to vector<8x32xf32>
    %32 = vector.extract_strided_slice %28 {offsets = [0, 96], sizes = [8, 32], strides = [1, 1]} : vector<8x128xf32> to vector<8x32xf32>
    %33 = arith.mulf %30, %15 : vector<8x32xf32>
    %34 = arith.mulf %29, %31 : vector<8x32xf32>
    %35 = arith.addf %33, %34 : vector<8x32xf32>
    %36 = math.tanh %35 : vector<8x32xf32>
    %37 = arith.mulf %32, %36 : vector<8x32xf32>
    %38 = vector.extract_strided_slice %0 {offsets = [0, 0], sizes = [8, 1], strides = [1, 1]} : vector<64x1xf32> to vector<8x1xf32>
    %cst_17 = arith.constant 0.000000e+00 : f32
    %39 = vector.broadcast %cst_17 : f32 to vector<8x1xf32>
    %40 = arith.cmpf ogt, %38, %39 : vector<8x1xf32>
    %cst_18 = arith.constant 0.000000e+00 : f32
    %41 = vector.shape_cast %40 : vector<8x1xi1> to vector<8x1xi1>
    %42 = vector.broadcast %41 : vector<8x1xi1> to vector<8x32xi1>
    %43 = vector.broadcast %cst_18 : f32 to vector<8x32xf32>
    %44 = arith.select %42, %37, %43 : vector<8x32xi1>, vector<8x32xf32>
    %c0_19 = arith.constant 0 : index
    %c0_20 = arith.constant 0 : index
    %45 = vector.load %arg13[%c0_19, %c0_20] : memref<64x32xf32, #tpu.memory_space<vmem>>, vector<8x32xf32>
    tpu.vector_store %arg13[%c0_19, %c0_20], %44 {strides = array<i32>} : memref<64x32xf32, #tpu.memory_space<vmem>>, vector<8x32xf32>,
    %46 = vector.shape_cast %40 : vector<8x1xi1> to vector<8x1xi1>
    %47 = vector.broadcast %46 : vector<8x1xi1> to vector<8x32xi1>
    %48 = arith.select %47, %37, %13 : vector<8x32xi1>, vector<8x32xf32>
    %49 = vector.shape_cast %40 : vector<8x1xi1> to vector<8x1xi1>
    %50 = vector.broadcast %49 : vector<8x1xi1> to vector<8x32xi1>
    %51 = arith.select %50, %35, %15 : vector<8x32xi1>, vector<8x32xf32>
    %52 = vector.extract_strided_slice %11 {offsets = [8, 0], sizes = [8, 128], strides = [1, 1]} : vector<64x128xf32> to vector<8x128xf32>
    %53 = arith.truncf %48 : vector<8x32xf32> to vector<8x32xbf16>
    %cst_21 = arith.constant dense<0.000000e+00> : vector<8x128xf32>
    %54 = tpu.matmul %53, %8, %cst_21 {dimension_numbers = #tpu.dot_dimension_numbers<[1], [0], [0], [1], [0, 0, 1, 1], [], []>} : vector<8x32xbf16>, vector<32x128xbf16>, vector<8x128xf32> -> vector<8x128xf32>
    %55 = arith.addf %52, %54 : vector<8x128xf32>
    %56 = vector.broadcast %9 : vector<1x128xf32> to vector<8x128xf32>
    %57 = arith.addf %55, %56 : vector<8x128xf32>
    %58 = math.tanh %57 : vector<8x128xf32>
    %59 = arith.negf %57 : vector<8x128xf32>
    %60 = math.exp %59 : vector<8x128xf32>
    %cst_22 = arith.constant 1.000000e+00 : f32
    %61 = vector.broadcast %cst_22 : f32 to vector<8x128xf32>
    %62 = arith.addf %61, %60 : vector<8x128xf32>
    %63 = arith.divf %61, %62 : vector<8x128xf32>
    %64 = arith.select %6, %58, %63 : vector<8x128xi1>, vector<8x128xf32>
    %65 = vector.extract_strided_slice %64 {offsets = [0, 0], sizes = [8, 32], strides = [1, 1]} : vector<8x128xf32> to vector<8x32xf32>
    %66 = vector.extract_strided_slice %64 {offsets = [0, 32], sizes = [8, 32], strides = [1, 1]} : vector<8x128xf32> to vector<8x32xf32>
    %67 = vector.extract_strided_slice %64 {offsets = [0, 64], sizes = [8, 32], strides = [1, 1]} : vector<8x128xf32> to vector<8x32xf32>
    %68 = vector.extract_strided_slice %64 {offsets = [0, 96], sizes = [8, 32], strides = [1, 1]} : vector<8x128xf32> to vector<8x32xf32>
    %69 = arith.mulf %66, %51 : vector<8x32xf32>
    %70 = arith.mulf %65, %67 : vector<8x32xf32>
    %71 = arith.addf %69, %70 : vector<8x32xf32>
    %72 = math.tanh %71 : vector<8x32xf32>
    %73 = arith.mulf %68, %72 : vector<8x32xf32>
    %74 = vector.extract_strided_slice %0 {offsets = [8, 0], sizes = [8, 1], strides = [1, 1]} : vector<64x1xf32> to vector<8x1xf32>
    %cst_23 = arith.constant 0.000000e+00 : f32
    %75 = vector.broadcast %cst_23 : f32 to vector<8x1xf32>
    %76 = arith.cmpf ogt, %74, %75 : vector<8x1xf32>
    %cst_24 = arith.constant 0.000000e+00 : f32
    %77 = vector.shape_cast %76 : vector<8x1xi1> to vector<8x1xi1>
    %78 = vector.broadcast %77 : vector<8x1xi1> to vector<8x32xi1>
    %79 = vector.broadcast %cst_24 : f32 to vector<8x32xf32>
    %80 = arith.select %78, %73, %79 : vector<8x32xi1>, vector<8x32xf32>
    %c8 = arith.constant 8 : index
    %c0_25 = arith.constant 0 : index
    %81 = vector.load %arg13[%c8, %c0_25] : memref<64x32xf32, #tpu.memory_space<vmem>>, vector<8x32xf32>
    tpu.vector_store %arg13[%c8, %c0_25], %80 {strides = array<i32>} : memref<64x32xf32, #tpu.memory_space<vmem>>, vector<8x32xf32>,
    %82 = vector.shape_cast %76 : vector<8x1xi1> to vector<8x1xi1>
    %83 = vector.broadcast %82 : vector<8x1xi1> to vector<8x32xi1>
    %84 = arith.select %83, %73, %48 : vector<8x32xi1>, vector<8x32xf32>
    %85 = vector.shape_cast %76 : vector<8x1xi1> to vector<8x1xi1>
    %86 = vector.broadcast %85 : vector<8x1xi1> to vector<8x32xi1>
    %87 = arith.select %86, %71, %51 : vector<8x32xi1>, vector<8x32xf32>
    %88 = vector.extract_strided_slice %11 {offsets = [16, 0], sizes = [8, 128], strides = [1, 1]} : vector<64x128xf32> to vector<8x128xf32>
    %89 = arith.truncf %84 : vector<8x32xf32> to vector<8x32xbf16>
    %cst_26 = arith.constant dense<0.000000e+00> : vector<8x128xf32>
    %90 = tpu.matmul %89, %8, %cst_26 {dimension_numbers = #tpu.dot_dimension_numbers<[1], [0], [0], [1], [0, 0, 1, 1], [], []>} : vector<8x32xbf16>, vector<32x128xbf16>, vector<8x128xf32> -> vector<8x128xf32>
    %91 = arith.addf %88, %90 : vector<8x128xf32>
    %92 = vector.broadcast %9 : vector<1x128xf32> to vector<8x128xf32>
    %93 = arith.addf %91, %92 : vector<8x128xf32>
    %94 = math.tanh %93 : vector<8x128xf32>
    %95 = arith.negf %93 : vector<8x128xf32>
    %96 = math.exp %95 : vector<8x128xf32>
    %cst_27 = arith.constant 1.000000e+00 : f32
    %97 = vector.broadcast %cst_27 : f32 to vector<8x128xf32>
    %98 = arith.addf %97, %96 : vector<8x128xf32>
    %99 = arith.divf %97, %98 : vector<8x128xf32>
    %100 = arith.select %6, %94, %99 : vector<8x128xi1>, vector<8x128xf32>
    %101 = vector.extract_strided_slice %100 {offsets = [0, 0], sizes = [8, 32], strides = [1, 1]} : vector<8x128xf32> to vector<8x32xf32>
    %102 = vector.extract_strided_slice %100 {offsets = [0, 32], sizes = [8, 32], strides = [1, 1]} : vector<8x128xf32> to vector<8x32xf32>
    %103 = vector.extract_strided_slice %100 {offsets = [0, 64], sizes = [8, 32], strides = [1, 1]} : vector<8x128xf32> to vector<8x32xf32>
    %104 = vector.extract_strided_slice %100 {offsets = [0, 96], sizes = [8, 32], strides = [1, 1]} : vector<8x128xf32> to vector<8x32xf32>
    %105 = arith.mulf %102, %87 : vector<8x32xf32>
    %106 = arith.mulf %101, %103 : vector<8x32xf32>
    %107 = arith.addf %105, %106 : vector<8x32xf32>
    %108 = math.tanh %107 : vector<8x32xf32>
    %109 = arith.mulf %104, %108 : vector<8x32xf32>
    %110 = vector.extract_strided_slice %0 {offsets = [16, 0], sizes = [8, 1], strides = [1, 1]} : vector<64x1xf32> to vector<8x1xf32>
    %cst_28 = arith.constant 0.000000e+00 : f32
    %111 = vector.broadcast %cst_28 : f32 to vector<8x1xf32>
    %112 = arith.cmpf ogt, %110, %111 : vector<8x1xf32>
    %cst_29 = arith.constant 0.000000e+00 : f32
    %113 = vector.shape_cast %112 : vector<8x1xi1> to vector<8x1xi1>
    %114 = vector.broadcast %113 : vector<8x1xi1> to vector<8x32xi1>
    %115 = vector.broadcast %cst_29 : f32 to vector<8x32xf32>
    %116 = arith.select %114, %109, %115 : vector<8x32xi1>, vector<8x32xf32>
    %c16 = arith.constant 16 : index
    %c0_30 = arith.constant 0 : index
    %117 = vector.load %arg13[%c16, %c0_30] : memref<64x32xf32, #tpu.memory_space<vmem>>, vector<8x32xf32>
    tpu.vector_store %arg13[%c16, %c0_30], %116 {strides = array<i32>} : memref<64x32xf32, #tpu.memory_space<vmem>>, vector<8x32xf32>,
    %118 = vector.shape_cast %112 : vector<8x1xi1> to vector<8x1xi1>
    %119 = vector.broadcast %118 : vector<8x1xi1> to vector<8x32xi1>
    %120 = arith.select %119, %109, %84 : vector<8x32xi1>, vector<8x32xf32>
    %121 = vector.shape_cast %112 : vector<8x1xi1> to vector<8x1xi1>
    %122 = vector.broadcast %121 : vector<8x1xi1> to vector<8x32xi1>
    %123 = arith.select %122, %107, %87 : vector<8x32xi1>, vector<8x32xf32>
    %124 = vector.extract_strided_slice %11 {offsets = [24, 0], sizes = [8, 128], strides = [1, 1]} : vector<64x128xf32> to vector<8x128xf32>
    %125 = arith.truncf %120 : vector<8x32xf32> to vector<8x32xbf16>
    %cst_31 = arith.constant dense<0.000000e+00> : vector<8x128xf32>
    %126 = tpu.matmul %125, %8, %cst_31 {dimension_numbers = #tpu.dot_dimension_numbers<[1], [0], [0], [1], [0, 0, 1, 1], [], []>} : vector<8x32xbf16>, vector<32x128xbf16>, vector<8x128xf32> -> vector<8x128xf32>
    %127 = arith.addf %124, %126 : vector<8x128xf32>
    %128 = vector.broadcast %9 : vector<1x128xf32> to vector<8x128xf32>
    %129 = arith.addf %127, %128 : vector<8x128xf32>
    %130 = math.tanh %129 : vector<8x128xf32>
    %131 = arith.negf %129 : vector<8x128xf32>
    %132 = math.exp %131 : vector<8x128xf32>
    %cst_32 = arith.constant 1.000000e+00 : f32
    %133 = vector.broadcast %cst_32 : f32 to vector<8x128xf32>
    %134 = arith.addf %133, %132 : vector<8x128xf32>
    %135 = arith.divf %133, %134 : vector<8x128xf32>
    %136 = arith.select %6, %130, %135 : vector<8x128xi1>, vector<8x128xf32>
    %137 = vector.extract_strided_slice %136 {offsets = [0, 0], sizes = [8, 32], strides = [1, 1]} : vector<8x128xf32> to vector<8x32xf32>
    %138 = vector.extract_strided_slice %136 {offsets = [0, 32], sizes = [8, 32], strides = [1, 1]} : vector<8x128xf32> to vector<8x32xf32>
    %139 = vector.extract_strided_slice %136 {offsets = [0, 64], sizes = [8, 32], strides = [1, 1]} : vector<8x128xf32> to vector<8x32xf32>
    %140 = vector.extract_strided_slice %136 {offsets = [0, 96], sizes = [8, 32], strides = [1, 1]} : vector<8x128xf32> to vector<8x32xf32>
    %141 = arith.mulf %138, %123 : vector<8x32xf32>
    %142 = arith.mulf %137, %139 : vector<8x32xf32>
    %143 = arith.addf %141, %142 : vector<8x32xf32>
    %144 = math.tanh %143 : vector<8x32xf32>
    %145 = arith.mulf %140, %144 : vector<8x32xf32>
    %146 = vector.extract_strided_slice %0 {offsets = [24, 0], sizes = [8, 1], strides = [1, 1]} : vector<64x1xf32> to vector<8x1xf32>
    %cst_33 = arith.constant 0.000000e+00 : f32
    %147 = vector.broadcast %cst_33 : f32 to vector<8x1xf32>
    %148 = arith.cmpf ogt, %146, %147 : vector<8x1xf32>
    %cst_34 = arith.constant 0.000000e+00 : f32
    %149 = vector.shape_cast %148 : vector<8x1xi1> to vector<8x1xi1>
    %150 = vector.broadcast %149 : vector<8x1xi1> to vector<8x32xi1>
    %151 = vector.broadcast %cst_34 : f32 to vector<8x32xf32>
    %152 = arith.select %150, %145, %151 : vector<8x32xi1>, vector<8x32xf32>
    %c24 = arith.constant 24 : index
    %c0_35 = arith.constant 0 : index
    %153 = vector.load %arg13[%c24, %c0_35] : memref<64x32xf32, #tpu.memory_space<vmem>>, vector<8x32xf32>
    tpu.vector_store %arg13[%c24, %c0_35], %152 {strides = array<i32>} : memref<64x32xf32, #tpu.memory_space<vmem>>, vector<8x32xf32>,
    %154 = vector.shape_cast %148 : vector<8x1xi1> to vector<8x1xi1>
    %155 = vector.broadcast %154 : vector<8x1xi1> to vector<8x32xi1>
    %156 = arith.select %155, %145, %120 : vector<8x32xi1>, vector<8x32xf32>
    %157 = vector.shape_cast %148 : vector<8x1xi1> to vector<8x1xi1>
    %158 = vector.broadcast %157 : vector<8x1xi1> to vector<8x32xi1>
    %159 = arith.select %158, %143, %123 : vector<8x32xi1>, vector<8x32xf32>
    %160 = vector.extract_strided_slice %11 {offsets = [32, 0], sizes = [8, 128], strides = [1, 1]} : vector<64x128xf32> to vector<8x128xf32>
    %161 = arith.truncf %156 : vector<8x32xf32> to vector<8x32xbf16>
    %cst_36 = arith.constant dense<0.000000e+00> : vector<8x128xf32>
    %162 = tpu.matmul %161, %8, %cst_36 {dimension_numbers = #tpu.dot_dimension_numbers<[1], [0], [0], [1], [0, 0, 1, 1], [], []>} : vector<8x32xbf16>, vector<32x128xbf16>, vector<8x128xf32> -> vector<8x128xf32>
    %163 = arith.addf %160, %162 : vector<8x128xf32>
    %164 = vector.broadcast %9 : vector<1x128xf32> to vector<8x128xf32>
    %165 = arith.addf %163, %164 : vector<8x128xf32>
    %166 = math.tanh %165 : vector<8x128xf32>
    %167 = arith.negf %165 : vector<8x128xf32>
    %168 = math.exp %167 : vector<8x128xf32>
    %cst_37 = arith.constant 1.000000e+00 : f32
    %169 = vector.broadcast %cst_37 : f32 to vector<8x128xf32>
    %170 = arith.addf %169, %168 : vector<8x128xf32>
    %171 = arith.divf %169, %170 : vector<8x128xf32>
    %172 = arith.select %6, %166, %171 : vector<8x128xi1>, vector<8x128xf32>
    %173 = vector.extract_strided_slice %172 {offsets = [0, 0], sizes = [8, 32], strides = [1, 1]} : vector<8x128xf32> to vector<8x32xf32>
    %174 = vector.extract_strided_slice %172 {offsets = [0, 32], sizes = [8, 32], strides = [1, 1]} : vector<8x128xf32> to vector<8x32xf32>
    %175 = vector.extract_strided_slice %172 {offsets = [0, 64], sizes = [8, 32], strides = [1, 1]} : vector<8x128xf32> to vector<8x32xf32>
    %176 = vector.extract_strided_slice %172 {offsets = [0, 96], sizes = [8, 32], strides = [1, 1]} : vector<8x128xf32> to vector<8x32xf32>
    %177 = arith.mulf %174, %159 : vector<8x32xf32>
    %178 = arith.mulf %173, %175 : vector<8x32xf32>
    %179 = arith.addf %177, %178 : vector<8x32xf32>
    %180 = math.tanh %179 : vector<8x32xf32>
    %181 = arith.mulf %176, %180 : vector<8x32xf32>
    %182 = vector.extract_strided_slice %0 {offsets = [32, 0], sizes = [8, 1], strides = [1, 1]} : vector<64x1xf32> to vector<8x1xf32>
    %cst_38 = arith.constant 0.000000e+00 : f32
    %183 = vector.broadcast %cst_38 : f32 to vector<8x1xf32>
    %184 = arith.cmpf ogt, %182, %183 : vector<8x1xf32>
    %cst_39 = arith.constant 0.000000e+00 : f32
    %185 = vector.shape_cast %184 : vector<8x1xi1> to vector<8x1xi1>
    %186 = vector.broadcast %185 : vector<8x1xi1> to vector<8x32xi1>
    %187 = vector.broadcast %cst_39 : f32 to vector<8x32xf32>
    %188 = arith.select %186, %181, %187 : vector<8x32xi1>, vector<8x32xf32>
    %c32 = arith.constant 32 : index
    %c0_40 = arith.constant 0 : index
    %189 = vector.load %arg13[%c32, %c0_40] : memref<64x32xf32, #tpu.memory_space<vmem>>, vector<8x32xf32>
    tpu.vector_store %arg13[%c32, %c0_40], %188 {strides = array<i32>} : memref<64x32xf32, #tpu.memory_space<vmem>>, vector<8x32xf32>,
    %190 = vector.shape_cast %184 : vector<8x1xi1> to vector<8x1xi1>
    %191 = vector.broadcast %190 : vector<8x1xi1> to vector<8x32xi1>
    %192 = arith.select %191, %181, %156 : vector<8x32xi1>, vector<8x32xf32>
    %193 = vector.shape_cast %184 : vector<8x1xi1> to vector<8x1xi1>
    %194 = vector.broadcast %193 : vector<8x1xi1> to vector<8x32xi1>
    %195 = arith.select %194, %179, %159 : vector<8x32xi1>, vector<8x32xf32>
    %196 = vector.extract_strided_slice %11 {offsets = [40, 0], sizes = [8, 128], strides = [1, 1]} : vector<64x128xf32> to vector<8x128xf32>
    %197 = arith.truncf %192 : vector<8x32xf32> to vector<8x32xbf16>
    %cst_41 = arith.constant dense<0.000000e+00> : vector<8x128xf32>
    %198 = tpu.matmul %197, %8, %cst_41 {dimension_numbers = #tpu.dot_dimension_numbers<[1], [0], [0], [1], [0, 0, 1, 1], [], []>} : vector<8x32xbf16>, vector<32x128xbf16>, vector<8x128xf32> -> vector<8x128xf32>
    %199 = arith.addf %196, %198 : vector<8x128xf32>
    %200 = vector.broadcast %9 : vector<1x128xf32> to vector<8x128xf32>
    %201 = arith.addf %199, %200 : vector<8x128xf32>
    %202 = math.tanh %201 : vector<8x128xf32>
    %203 = arith.negf %201 : vector<8x128xf32>
    %204 = math.exp %203 : vector<8x128xf32>
    %cst_42 = arith.constant 1.000000e+00 : f32
    %205 = vector.broadcast %cst_42 : f32 to vector<8x128xf32>
    %206 = arith.addf %205, %204 : vector<8x128xf32>
    %207 = arith.divf %205, %206 : vector<8x128xf32>
    %208 = arith.select %6, %202, %207 : vector<8x128xi1>, vector<8x128xf32>
    %209 = vector.extract_strided_slice %208 {offsets = [0, 0], sizes = [8, 32], strides = [1, 1]} : vector<8x128xf32> to vector<8x32xf32>
    %210 = vector.extract_strided_slice %208 {offsets = [0, 32], sizes = [8, 32], strides = [1, 1]} : vector<8x128xf32> to vector<8x32xf32>
    %211 = vector.extract_strided_slice %208 {offsets = [0, 64], sizes = [8, 32], strides = [1, 1]} : vector<8x128xf32> to vector<8x32xf32>
    %212 = vector.extract_strided_slice %208 {offsets = [0, 96], sizes = [8, 32], strides = [1, 1]} : vector<8x128xf32> to vector<8x32xf32>
    %213 = arith.mulf %210, %195 : vector<8x32xf32>
    %214 = arith.mulf %209, %211 : vector<8x32xf32>
    %215 = arith.addf %213, %214 : vector<8x32xf32>
    %216 = math.tanh %215 : vector<8x32xf32>
    %217 = arith.mulf %212, %216 : vector<8x32xf32>
    %218 = vector.extract_strided_slice %0 {offsets = [40, 0], sizes = [8, 1], strides = [1, 1]} : vector<64x1xf32> to vector<8x1xf32>
    %cst_43 = arith.constant 0.000000e+00 : f32
    %219 = vector.broadcast %cst_43 : f32 to vector<8x1xf32>
    %220 = arith.cmpf ogt, %218, %219 : vector<8x1xf32>
    %cst_44 = arith.constant 0.000000e+00 : f32
    %221 = vector.shape_cast %220 : vector<8x1xi1> to vector<8x1xi1>
    %222 = vector.broadcast %221 : vector<8x1xi1> to vector<8x32xi1>
    %223 = vector.broadcast %cst_44 : f32 to vector<8x32xf32>
    %224 = arith.select %222, %217, %223 : vector<8x32xi1>, vector<8x32xf32>
    %c40 = arith.constant 40 : index
    %c0_45 = arith.constant 0 : index
    %225 = vector.load %arg13[%c40, %c0_45] : memref<64x32xf32, #tpu.memory_space<vmem>>, vector<8x32xf32>
    tpu.vector_store %arg13[%c40, %c0_45], %224 {strides = array<i32>} : memref<64x32xf32, #tpu.memory_space<vmem>>, vector<8x32xf32>,
    %226 = vector.shape_cast %220 : vector<8x1xi1> to vector<8x1xi1>
    %227 = vector.broadcast %226 : vector<8x1xi1> to vector<8x32xi1>
    %228 = arith.select %227, %217, %192 : vector<8x32xi1>, vector<8x32xf32>
    %229 = vector.shape_cast %220 : vector<8x1xi1> to vector<8x1xi1>
    %230 = vector.broadcast %229 : vector<8x1xi1> to vector<8x32xi1>
    %231 = arith.select %230, %215, %195 : vector<8x32xi1>, vector<8x32xf32>
    %232 = vector.extract_strided_slice %11 {offsets = [48, 0], sizes = [8, 128], strides = [1, 1]} : vector<64x128xf32> to vector<8x128xf32>
    %233 = arith.truncf %228 : vector<8x32xf32> to vector<8x32xbf16>
    %cst_46 = arith.constant dense<0.000000e+00> : vector<8x128xf32>
    %234 = tpu.matmul %233, %8, %cst_46 {dimension_numbers = #tpu.dot_dimension_numbers<[1], [0], [0], [1], [0, 0, 1, 1], [], []>} : vector<8x32xbf16>, vector<32x128xbf16>, vector<8x128xf32> -> vector<8x128xf32>
    %235 = arith.addf %232, %234 : vector<8x128xf32>
    %236 = vector.broadcast %9 : vector<1x128xf32> to vector<8x128xf32>
    %237 = arith.addf %235, %236 : vector<8x128xf32>
    %238 = math.tanh %237 : vector<8x128xf32>
    %239 = arith.negf %237 : vector<8x128xf32>
    %240 = math.exp %239 : vector<8x128xf32>
    %cst_47 = arith.constant 1.000000e+00 : f32
    %241 = vector.broadcast %cst_47 : f32 to vector<8x128xf32>
    %242 = arith.addf %241, %240 : vector<8x128xf32>
    %243 = arith.divf %241, %242 : vector<8x128xf32>
    %244 = arith.select %6, %238, %243 : vector<8x128xi1>, vector<8x128xf32>
    %245 = vector.extract_strided_slice %244 {offsets = [0, 0], sizes = [8, 32], strides = [1, 1]} : vector<8x128xf32> to vector<8x32xf32>
    %246 = vector.extract_strided_slice %244 {offsets = [0, 32], sizes = [8, 32], strides = [1, 1]} : vector<8x128xf32> to vector<8x32xf32>
    %247 = vector.extract_strided_slice %244 {offsets = [0, 64], sizes = [8, 32], strides = [1, 1]} : vector<8x128xf32> to vector<8x32xf32>
    %248 = vector.extract_strided_slice %244 {offsets = [0, 96], sizes = [8, 32], strides = [1, 1]} : vector<8x128xf32> to vector<8x32xf32>
    %249 = arith.mulf %246, %231 : vector<8x32xf32>
    %250 = arith.mulf %245, %247 : vector<8x32xf32>
    %251 = arith.addf %249, %250 : vector<8x32xf32>
    %252 = math.tanh %251 : vector<8x32xf32>
    %253 = arith.mulf %248, %252 : vector<8x32xf32>
    %254 = vector.extract_strided_slice %0 {offsets = [48, 0], sizes = [8, 1], strides = [1, 1]} : vector<64x1xf32> to vector<8x1xf32>
    %cst_48 = arith.constant 0.000000e+00 : f32
    %255 = vector.broadcast %cst_48 : f32 to vector<8x1xf32>
    %256 = arith.cmpf ogt, %254, %255 : vector<8x1xf32>
    %cst_49 = arith.constant 0.000000e+00 : f32
    %257 = vector.shape_cast %256 : vector<8x1xi1> to vector<8x1xi1>
    %258 = vector.broadcast %257 : vector<8x1xi1> to vector<8x32xi1>
    %259 = vector.broadcast %cst_49 : f32 to vector<8x32xf32>
    %260 = arith.select %258, %253, %259 : vector<8x32xi1>, vector<8x32xf32>
    %c48 = arith.constant 48 : index
    %c0_50 = arith.constant 0 : index
    %261 = vector.load %arg13[%c48, %c0_50] : memref<64x32xf32, #tpu.memory_space<vmem>>, vector<8x32xf32>
    tpu.vector_store %arg13[%c48, %c0_50], %260 {strides = array<i32>} : memref<64x32xf32, #tpu.memory_space<vmem>>, vector<8x32xf32>,
    %262 = vector.shape_cast %256 : vector<8x1xi1> to vector<8x1xi1>
    %263 = vector.broadcast %262 : vector<8x1xi1> to vector<8x32xi1>
    %264 = arith.select %263, %253, %228 : vector<8x32xi1>, vector<8x32xf32>
    %265 = vector.shape_cast %256 : vector<8x1xi1> to vector<8x1xi1>
    %266 = vector.broadcast %265 : vector<8x1xi1> to vector<8x32xi1>
    %267 = arith.select %266, %251, %231 : vector<8x32xi1>, vector<8x32xf32>
    %268 = vector.extract_strided_slice %11 {offsets = [56, 0], sizes = [8, 128], strides = [1, 1]} : vector<64x128xf32> to vector<8x128xf32>
    %269 = arith.truncf %264 : vector<8x32xf32> to vector<8x32xbf16>
    %cst_51 = arith.constant dense<0.000000e+00> : vector<8x128xf32>
    %270 = tpu.matmul %269, %8, %cst_51 {dimension_numbers = #tpu.dot_dimension_numbers<[1], [0], [0], [1], [0, 0, 1, 1], [], []>} : vector<8x32xbf16>, vector<32x128xbf16>, vector<8x128xf32> -> vector<8x128xf32>
    %271 = arith.addf %268, %270 : vector<8x128xf32>
    %272 = vector.broadcast %9 : vector<1x128xf32> to vector<8x128xf32>
    %273 = arith.addf %271, %272 : vector<8x128xf32>
    %274 = math.tanh %273 : vector<8x128xf32>
    %275 = arith.negf %273 : vector<8x128xf32>
    %276 = math.exp %275 : vector<8x128xf32>
    %cst_52 = arith.constant 1.000000e+00 : f32
    %277 = vector.broadcast %cst_52 : f32 to vector<8x128xf32>
    %278 = arith.addf %277, %276 : vector<8x128xf32>
    %279 = arith.divf %277, %278 : vector<8x128xf32>
    %280 = arith.select %6, %274, %279 : vector<8x128xi1>, vector<8x128xf32>
    %281 = vector.extract_strided_slice %280 {offsets = [0, 0], sizes = [8, 32], strides = [1, 1]} : vector<8x128xf32> to vector<8x32xf32>
    %282 = vector.extract_strided_slice %280 {offsets = [0, 32], sizes = [8, 32], strides = [1, 1]} : vector<8x128xf32> to vector<8x32xf32>
    %283 = vector.extract_strided_slice %280 {offsets = [0, 64], sizes = [8, 32], strides = [1, 1]} : vector<8x128xf32> to vector<8x32xf32>
    %284 = vector.extract_strided_slice %280 {offsets = [0, 96], sizes = [8, 32], strides = [1, 1]} : vector<8x128xf32> to vector<8x32xf32>
    %285 = arith.mulf %282, %267 : vector<8x32xf32>
    %286 = arith.mulf %281, %283 : vector<8x32xf32>
    %287 = arith.addf %285, %286 : vector<8x32xf32>
    %288 = math.tanh %287 : vector<8x32xf32>
    %289 = arith.mulf %284, %288 : vector<8x32xf32>
    %290 = vector.extract_strided_slice %0 {offsets = [56, 0], sizes = [8, 1], strides = [1, 1]} : vector<64x1xf32> to vector<8x1xf32>
    %cst_53 = arith.constant 0.000000e+00 : f32
    %291 = vector.broadcast %cst_53 : f32 to vector<8x1xf32>
    %292 = arith.cmpf ogt, %290, %291 : vector<8x1xf32>
    %cst_54 = arith.constant 0.000000e+00 : f32
    %293 = vector.shape_cast %292 : vector<8x1xi1> to vector<8x1xi1>
    %294 = vector.broadcast %293 : vector<8x1xi1> to vector<8x32xi1>
    %295 = vector.broadcast %cst_54 : f32 to vector<8x32xf32>
    %296 = arith.select %294, %289, %295 : vector<8x32xi1>, vector<8x32xf32>
    %c56 = arith.constant 56 : index
    %c0_55 = arith.constant 0 : index
    %297 = vector.load %arg13[%c56, %c0_55] : memref<64x32xf32, #tpu.memory_space<vmem>>, vector<8x32xf32>
    tpu.vector_store %arg13[%c56, %c0_55], %296 {strides = array<i32>} : memref<64x32xf32, #tpu.memory_space<vmem>>, vector<8x32xf32>,
    %c0_56 = arith.constant 0 : index
    %c0_57 = arith.constant 0 : index
    %298 = vector.load %arg7[%c0_56, %c0_57] : memref<32x128xbf16, #tpu.memory_space<vmem>>, vector<32x128xbf16>
    %c0_58 = arith.constant 0 : index
    %c0_59 = arith.constant 0 : index
    %299 = vector.load %arg8[%c0_58, %c0_59] : memref<32x128xbf16, #tpu.memory_space<vmem>>, vector<32x128xbf16>
    %c0_60 = arith.constant 0 : index
    %c0_61 = arith.constant 0 : index
    %300 = vector.load %arg9[%c0_60, %c0_61] : memref<1x128xf32, #tpu.memory_space<vmem>>, vector<1x128xf32>
    %c0_62 = arith.constant 0 : index
    %c0_63 = arith.constant 0 : index
    %301 = vector.load %arg13[%c0_62, %c0_63] : memref<64x32xf32, #tpu.memory_space<vmem>>, vector<64x32xf32>
    %302 = arith.truncf %301 : vector<64x32xf32> to vector<64x32xbf16>
    %cst_64 = arith.constant dense<0.000000e+00> : vector<64x128xf32>
    %303 = tpu.matmul %302, %298, %cst_64 {dimension_numbers = #tpu.dot_dimension_numbers<[1], [0], [0], [1], [0, 0, 1, 1], [], []>} : vector<64x32xbf16>, vector<32x128xbf16>, vector<64x128xf32> -> vector<64x128xf32>
    %c1 = arith.constant 1 : index
    %c0_65 = arith.constant 0 : index
    %c0_66 = arith.constant 0 : index
    %304 = vector.load %arg2[%c1, %c0_65, %c0_66] : memref<2x8x32xf32, #tpu.memory_space<vmem>>, vector<1x8x32xf32>
    %305 = vector.shape_cast %304 : vector<1x8x32xf32> to vector<8x32xf32>
    %c1_67 = arith.constant 1 : index
    %c0_68 = arith.constant 0 : index
    %c0_69 = arith.constant 0 : index
    %306 = vector.load %arg3[%c1_67, %c0_68, %c0_69] : memref<2x8x32xf32, #tpu.memory_space<vmem>>, vector<1x8x32xf32>
    %307 = vector.shape_cast %306 : vector<1x8x32xf32> to vector<8x32xf32>
    %308 = vector.extract_strided_slice %303 {offsets = [0, 0], sizes = [8, 128], strides = [1, 1]} : vector<64x128xf32> to vector<8x128xf32>
    %309 = arith.truncf %305 : vector<8x32xf32> to vector<8x32xbf16>
    %cst_70 = arith.constant dense<0.000000e+00> : vector<8x128xf32>
    %310 = tpu.matmul %309, %299, %cst_70 {dimension_numbers = #tpu.dot_dimension_numbers<[1], [0], [0], [1], [0, 0, 1, 1], [], []>} : vector<8x32xbf16>, vector<32x128xbf16>, vector<8x128xf32> -> vector<8x128xf32>
    %311 = arith.addf %308, %310 : vector<8x128xf32>
    %312 = vector.broadcast %300 : vector<1x128xf32> to vector<8x128xf32>
    %313 = arith.addf %311, %312 : vector<8x128xf32>
    %314 = math.tanh %313 : vector<8x128xf32>
    %315 = arith.negf %313 : vector<8x128xf32>
    %316 = math.exp %315 : vector<8x128xf32>
    %cst_71 = arith.constant 1.000000e+00 : f32
    %317 = vector.broadcast %cst_71 : f32 to vector<8x128xf32>
    %318 = arith.addf %317, %316 : vector<8x128xf32>
    %319 = arith.divf %317, %318 : vector<8x128xf32>
    %320 = arith.select %6, %314, %319 : vector<8x128xi1>, vector<8x128xf32>
    %321 = vector.extract_strided_slice %320 {offsets = [0, 0], sizes = [8, 32], strides = [1, 1]} : vector<8x128xf32> to vector<8x32xf32>
    %322 = vector.extract_strided_slice %320 {offsets = [0, 32], sizes = [8, 32], strides = [1, 1]} : vector<8x128xf32> to vector<8x32xf32>
    %323 = vector.extract_strided_slice %320 {offsets = [0, 64], sizes = [8, 32], strides = [1, 1]} : vector<8x128xf32> to vector<8x32xf32>
    %324 = vector.extract_strided_slice %320 {offsets = [0, 96], sizes = [8, 32], strides = [1, 1]} : vector<8x128xf32> to vector<8x32xf32>
    %325 = arith.mulf %322, %307 : vector<8x32xf32>
    %326 = arith.mulf %321, %323 : vector<8x32xf32>
    %327 = arith.addf %325, %326 : vector<8x32xf32>
    %328 = math.tanh %327 : vector<8x32xf32>
    %329 = arith.mulf %324, %328 : vector<8x32xf32>
    %330 = vector.extract_strided_slice %0 {offsets = [0, 0], sizes = [8, 1], strides = [1, 1]} : vector<64x1xf32> to vector<8x1xf32>
    %cst_72 = arith.constant 0.000000e+00 : f32
    %331 = vector.broadcast %cst_72 : f32 to vector<8x1xf32>
    %332 = arith.cmpf ogt, %330, %331 : vector<8x1xf32>
    %cst_73 = arith.constant 0.000000e+00 : f32
    %333 = vector.shape_cast %332 : vector<8x1xi1> to vector<8x1xi1>
    %334 = vector.broadcast %333 : vector<8x1xi1> to vector<8x32xi1>
    %335 = vector.broadcast %cst_73 : f32 to vector<8x32xf32>
    %336 = arith.select %334, %329, %335 : vector<8x32xi1>, vector<8x32xf32>
    %c0_74 = arith.constant 0 : index
    %c0_75 = arith.constant 0 : index
    %337 = vector.load %arg13[%c0_74, %c0_75] : memref<64x32xf32, #tpu.memory_space<vmem>>, vector<8x32xf32>
    tpu.vector_store %arg13[%c0_74, %c0_75], %336 {strides = array<i32>} : memref<64x32xf32, #tpu.memory_space<vmem>>, vector<8x32xf32>,
    %338 = vector.shape_cast %332 : vector<8x1xi1> to vector<8x1xi1>
    %339 = vector.broadcast %338 : vector<8x1xi1> to vector<8x32xi1>
    %340 = arith.select %339, %329, %305 : vector<8x32xi1>, vector<8x32xf32>
    %341 = vector.shape_cast %332 : vector<8x1xi1> to vector<8x1xi1>
    %342 = vector.broadcast %341 : vector<8x1xi1> to vector<8x32xi1>
    %343 = arith.select %342, %327, %307 : vector<8x32xi1>, vector<8x32xf32>
    %344 = vector.extract_strided_slice %303 {offsets = [8, 0], sizes = [8, 128], strides = [1, 1]} : vector<64x128xf32> to vector<8x128xf32>
    %345 = arith.truncf %340 : vector<8x32xf32> to vector<8x32xbf16>
    %cst_76 = arith.constant dense<0.000000e+00> : vector<8x128xf32>
    %346 = tpu.matmul %345, %299, %cst_76 {dimension_numbers = #tpu.dot_dimension_numbers<[1], [0], [0], [1], [0, 0, 1, 1], [], []>} : vector<8x32xbf16>, vector<32x128xbf16>, vector<8x128xf32> -> vector<8x128xf32>
    %347 = arith.addf %344, %346 : vector<8x128xf32>
    %348 = vector.broadcast %300 : vector<1x128xf32> to vector<8x128xf32>
    %349 = arith.addf %347, %348 : vector<8x128xf32>
    %350 = math.tanh %349 : vector<8x128xf32>
    %351 = arith.negf %349 : vector<8x128xf32>
    %352 = math.exp %351 : vector<8x128xf32>
    %cst_77 = arith.constant 1.000000e+00 : f32
    %353 = vector.broadcast %cst_77 : f32 to vector<8x128xf32>
    %354 = arith.addf %353, %352 : vector<8x128xf32>
    %355 = arith.divf %353, %354 : vector<8x128xf32>
    %356 = arith.select %6, %350, %355 : vector<8x128xi1>, vector<8x128xf32>
    %357 = vector.extract_strided_slice %356 {offsets = [0, 0], sizes = [8, 32], strides = [1, 1]} : vector<8x128xf32> to vector<8x32xf32>
    %358 = vector.extract_strided_slice %356 {offsets = [0, 32], sizes = [8, 32], strides = [1, 1]} : vector<8x128xf32> to vector<8x32xf32>
    %359 = vector.extract_strided_slice %356 {offsets = [0, 64], sizes = [8, 32], strides = [1, 1]} : vector<8x128xf32> to vector<8x32xf32>
    %360 = vector.extract_strided_slice %356 {offsets = [0, 96], sizes = [8, 32], strides = [1, 1]} : vector<8x128xf32> to vector<8x32xf32>
    %361 = arith.mulf %358, %343 : vector<8x32xf32>
    %362 = arith.mulf %357, %359 : vector<8x32xf32>
    %363 = arith.addf %361, %362 : vector<8x32xf32>
    %364 = math.tanh %363 : vector<8x32xf32>
    %365 = arith.mulf %360, %364 : vector<8x32xf32>
    %366 = vector.extract_strided_slice %0 {offsets = [8, 0], sizes = [8, 1], strides = [1, 1]} : vector<64x1xf32> to vector<8x1xf32>
    %cst_78 = arith.constant 0.000000e+00 : f32
    %367 = vector.broadcast %cst_78 : f32 to vector<8x1xf32>
    %368 = arith.cmpf ogt, %366, %367 : vector<8x1xf32>
    %cst_79 = arith.constant 0.000000e+00 : f32
    %369 = vector.shape_cast %368 : vector<8x1xi1> to vector<8x1xi1>
    %370 = vector.broadcast %369 : vector<8x1xi1> to vector<8x32xi1>
    %371 = vector.broadcast %cst_79 : f32 to vector<8x32xf32>
    %372 = arith.select %370, %365, %371 : vector<8x32xi1>, vector<8x32xf32>
    %c8_80 = arith.constant 8 : index
    %c0_81 = arith.constant 0 : index
    %373 = vector.load %arg13[%c8_80, %c0_81] : memref<64x32xf32, #tpu.memory_space<vmem>>, vector<8x32xf32>
    tpu.vector_store %arg13[%c8_80, %c0_81], %372 {strides = array<i32>} : memref<64x32xf32, #tpu.memory_space<vmem>>, vector<8x32xf32>,
    %374 = vector.shape_cast %368 : vector<8x1xi1> to vector<8x1xi1>
    %375 = vector.broadcast %374 : vector<8x1xi1> to vector<8x32xi1>
    %376 = arith.select %375, %365, %340 : vector<8x32xi1>, vector<8x32xf32>
    %377 = vector.shape_cast %368 : vector<8x1xi1> to vector<8x1xi1>
    %378 = vector.broadcast %377 : vector<8x1xi1> to vector<8x32xi1>
    %379 = arith.select %378, %363, %343 : vector<8x32xi1>, vector<8x32xf32>
    %380 = vector.extract_strided_slice %303 {offsets = [16, 0], sizes = [8, 128], strides = [1, 1]} : vector<64x128xf32> to vector<8x128xf32>
    %381 = arith.truncf %376 : vector<8x32xf32> to vector<8x32xbf16>
    %cst_82 = arith.constant dense<0.000000e+00> : vector<8x128xf32>
    %382 = tpu.matmul %381, %299, %cst_82 {dimension_numbers = #tpu.dot_dimension_numbers<[1], [0], [0], [1], [0, 0, 1, 1], [], []>} : vector<8x32xbf16>, vector<32x128xbf16>, vector<8x128xf32> -> vector<8x128xf32>
    %383 = arith.addf %380, %382 : vector<8x128xf32>
    %384 = vector.broadcast %300 : vector<1x128xf32> to vector<8x128xf32>
    %385 = arith.addf %383, %384 : vector<8x128xf32>
    %386 = math.tanh %385 : vector<8x128xf32>
    %387 = arith.negf %385 : vector<8x128xf32>
    %388 = math.exp %387 : vector<8x128xf32>
    %cst_83 = arith.constant 1.000000e+00 : f32
    %389 = vector.broadcast %cst_83 : f32 to vector<8x128xf32>
    %390 = arith.addf %389, %388 : vector<8x128xf32>
    %391 = arith.divf %389, %390 : vector<8x128xf32>
    %392 = arith.select %6, %386, %391 : vector<8x128xi1>, vector<8x128xf32>
    %393 = vector.extract_strided_slice %392 {offsets = [0, 0], sizes = [8, 32], strides = [1, 1]} : vector<8x128xf32> to vector<8x32xf32>
    %394 = vector.extract_strided_slice %392 {offsets = [0, 32], sizes = [8, 32], strides = [1, 1]} : vector<8x128xf32> to vector<8x32xf32>
    %395 = vector.extract_strided_slice %392 {offsets = [0, 64], sizes = [8, 32], strides = [1, 1]} : vector<8x128xf32> to vector<8x32xf32>
    %396 = vector.extract_strided_slice %392 {offsets = [0, 96], sizes = [8, 32], strides = [1, 1]} : vector<8x128xf32> to vector<8x32xf32>
    %397 = arith.mulf %394, %379 : vector<8x32xf32>
    %398 = arith.mulf %393, %395 : vector<8x32xf32>
    %399 = arith.addf %397, %398 : vector<8x32xf32>
    %400 = math.tanh %399 : vector<8x32xf32>
    %401 = arith.mulf %396, %400 : vector<8x32xf32>
    %402 = vector.extract_strided_slice %0 {offsets = [16, 0], sizes = [8, 1], strides = [1, 1]} : vector<64x1xf32> to vector<8x1xf32>
    %cst_84 = arith.constant 0.000000e+00 : f32
    %403 = vector.broadcast %cst_84 : f32 to vector<8x1xf32>
    %404 = arith.cmpf ogt, %402, %403 : vector<8x1xf32>
    %cst_85 = arith.constant 0.000000e+00 : f32
    %405 = vector.shape_cast %404 : vector<8x1xi1> to vector<8x1xi1>
    %406 = vector.broadcast %405 : vector<8x1xi1> to vector<8x32xi1>
    %407 = vector.broadcast %cst_85 : f32 to vector<8x32xf32>
    %408 = arith.select %406, %401, %407 : vector<8x32xi1>, vector<8x32xf32>
    %c16_86 = arith.constant 16 : index
    %c0_87 = arith.constant 0 : index
    %409 = vector.load %arg13[%c16_86, %c0_87] : memref<64x32xf32, #tpu.memory_space<vmem>>, vector<8x32xf32>
    tpu.vector_store %arg13[%c16_86, %c0_87], %408 {strides = array<i32>} : memref<64x32xf32, #tpu.memory_space<vmem>>, vector<8x32xf32>,
    %410 = vector.shape_cast %404 : vector<8x1xi1> to vector<8x1xi1>
    %411 = vector.broadcast %410 : vector<8x1xi1> to vector<8x32xi1>
    %412 = arith.select %411, %401, %376 : vector<8x32xi1>, vector<8x32xf32>
    %413 = vector.shape_cast %404 : vector<8x1xi1> to vector<8x1xi1>
    %414 = vector.broadcast %413 : vector<8x1xi1> to vector<8x32xi1>
    %415 = arith.select %414, %399, %379 : vector<8x32xi1>, vector<8x32xf32>
    %416 = vector.extract_strided_slice %303 {offsets = [24, 0], sizes = [8, 128], strides = [1, 1]} : vector<64x128xf32> to vector<8x128xf32>
    %417 = arith.truncf %412 : vector<8x32xf32> to vector<8x32xbf16>
    %cst_88 = arith.constant dense<0.000000e+00> : vector<8x128xf32>
    %418 = tpu.matmul %417, %299, %cst_88 {dimension_numbers = #tpu.dot_dimension_numbers<[1], [0], [0], [1], [0, 0, 1, 1], [], []>} : vector<8x32xbf16>, vector<32x128xbf16>, vector<8x128xf32> -> vector<8x128xf32>
    %419 = arith.addf %416, %418 : vector<8x128xf32>
    %420 = vector.broadcast %300 : vector<1x128xf32> to vector<8x128xf32>
    %421 = arith.addf %419, %420 : vector<8x128xf32>
    %422 = math.tanh %421 : vector<8x128xf32>
    %423 = arith.negf %421 : vector<8x128xf32>
    %424 = math.exp %423 : vector<8x128xf32>
    %cst_89 = arith.constant 1.000000e+00 : f32
    %425 = vector.broadcast %cst_89 : f32 to vector<8x128xf32>
    %426 = arith.addf %425, %424 : vector<8x128xf32>
    %427 = arith.divf %425, %426 : vector<8x128xf32>
    %428 = arith.select %6, %422, %427 : vector<8x128xi1>, vector<8x128xf32>
    %429 = vector.extract_strided_slice %428 {offsets = [0, 0], sizes = [8, 32], strides = [1, 1]} : vector<8x128xf32> to vector<8x32xf32>
    %430 = vector.extract_strided_slice %428 {offsets = [0, 32], sizes = [8, 32], strides = [1, 1]} : vector<8x128xf32> to vector<8x32xf32>
    %431 = vector.extract_strided_slice %428 {offsets = [0, 64], sizes = [8, 32], strides = [1, 1]} : vector<8x128xf32> to vector<8x32xf32>
    %432 = vector.extract_strided_slice %428 {offsets = [0, 96], sizes = [8, 32], strides = [1, 1]} : vector<8x128xf32> to vector<8x32xf32>
    %433 = arith.mulf %430, %415 : vector<8x32xf32>
    %434 = arith.mulf %429, %431 : vector<8x32xf32>
    %435 = arith.addf %433, %434 : vector<8x32xf32>
    %436 = math.tanh %435 : vector<8x32xf32>
    %437 = arith.mulf %432, %436 : vector<8x32xf32>
    %438 = vector.extract_strided_slice %0 {offsets = [24, 0], sizes = [8, 1], strides = [1, 1]} : vector<64x1xf32> to vector<8x1xf32>
    %cst_90 = arith.constant 0.000000e+00 : f32
    %439 = vector.broadcast %cst_90 : f32 to vector<8x1xf32>
    %440 = arith.cmpf ogt, %438, %439 : vector<8x1xf32>
    %cst_91 = arith.constant 0.000000e+00 : f32
    %441 = vector.shape_cast %440 : vector<8x1xi1> to vector<8x1xi1>
    %442 = vector.broadcast %441 : vector<8x1xi1> to vector<8x32xi1>
    %443 = vector.broadcast %cst_91 : f32 to vector<8x32xf32>
    %444 = arith.select %442, %437, %443 : vector<8x32xi1>, vector<8x32xf32>
    %c24_92 = arith.constant 24 : index
    %c0_93 = arith.constant 0 : index
    %445 = vector.load %arg13[%c24_92, %c0_93] : memref<64x32xf32, #tpu.memory_space<vmem>>, vector<8x32xf32>
    tpu.vector_store %arg13[%c24_92, %c0_93], %444 {strides = array<i32>} : memref<64x32xf32, #tpu.memory_space<vmem>>, vector<8x32xf32>,
    %446 = vector.shape_cast %440 : vector<8x1xi1> to vector<8x1xi1>
    %447 = vector.broadcast %446 : vector<8x1xi1> to vector<8x32xi1>
    %448 = arith.select %447, %437, %412 : vector<8x32xi1>, vector<8x32xf32>
    %449 = vector.shape_cast %440 : vector<8x1xi1> to vector<8x1xi1>
    %450 = vector.broadcast %449 : vector<8x1xi1> to vector<8x32xi1>
    %451 = arith.select %450, %435, %415 : vector<8x32xi1>, vector<8x32xf32>
    %452 = vector.extract_strided_slice %303 {offsets = [32, 0], sizes = [8, 128], strides = [1, 1]} : vector<64x128xf32> to vector<8x128xf32>
    %453 = arith.truncf %448 : vector<8x32xf32> to vector<8x32xbf16>
    %cst_94 = arith.constant dense<0.000000e+00> : vector<8x128xf32>
    %454 = tpu.matmul %453, %299, %cst_94 {dimension_numbers = #tpu.dot_dimension_numbers<[1], [0], [0], [1], [0, 0, 1, 1], [], []>} : vector<8x32xbf16>, vector<32x128xbf16>, vector<8x128xf32> -> vector<8x128xf32>
    %455 = arith.addf %452, %454 : vector<8x128xf32>
    %456 = vector.broadcast %300 : vector<1x128xf32> to vector<8x128xf32>
    %457 = arith.addf %455, %456 : vector<8x128xf32>
    %458 = math.tanh %457 : vector<8x128xf32>
    %459 = arith.negf %457 : vector<8x128xf32>
    %460 = math.exp %459 : vector<8x128xf32>
    %cst_95 = arith.constant 1.000000e+00 : f32
    %461 = vector.broadcast %cst_95 : f32 to vector<8x128xf32>
    %462 = arith.addf %461, %460 : vector<8x128xf32>
    %463 = arith.divf %461, %462 : vector<8x128xf32>
    %464 = arith.select %6, %458, %463 : vector<8x128xi1>, vector<8x128xf32>
    %465 = vector.extract_strided_slice %464 {offsets = [0, 0], sizes = [8, 32], strides = [1, 1]} : vector<8x128xf32> to vector<8x32xf32>
    %466 = vector.extract_strided_slice %464 {offsets = [0, 32], sizes = [8, 32], strides = [1, 1]} : vector<8x128xf32> to vector<8x32xf32>
    %467 = vector.extract_strided_slice %464 {offsets = [0, 64], sizes = [8, 32], strides = [1, 1]} : vector<8x128xf32> to vector<8x32xf32>
    %468 = vector.extract_strided_slice %464 {offsets = [0, 96], sizes = [8, 32], strides = [1, 1]} : vector<8x128xf32> to vector<8x32xf32>
    %469 = arith.mulf %466, %451 : vector<8x32xf32>
    %470 = arith.mulf %465, %467 : vector<8x32xf32>
    %471 = arith.addf %469, %470 : vector<8x32xf32>
    %472 = math.tanh %471 : vector<8x32xf32>
    %473 = arith.mulf %468, %472 : vector<8x32xf32>
    %474 = vector.extract_strided_slice %0 {offsets = [32, 0], sizes = [8, 1], strides = [1, 1]} : vector<64x1xf32> to vector<8x1xf32>
    %cst_96 = arith.constant 0.000000e+00 : f32
    %475 = vector.broadcast %cst_96 : f32 to vector<8x1xf32>
    %476 = arith.cmpf ogt, %474, %475 : vector<8x1xf32>
    %cst_97 = arith.constant 0.000000e+00 : f32
    %477 = vector.shape_cast %476 : vector<8x1xi1> to vector<8x1xi1>
    %478 = vector.broadcast %477 : vector<8x1xi1> to vector<8x32xi1>
    %479 = vector.broadcast %cst_97 : f32 to vector<8x32xf32>
    %480 = arith.select %478, %473, %479 : vector<8x32xi1>, vector<8x32xf32>
    %c32_98 = arith.constant 32 : index
    %c0_99 = arith.constant 0 : index
    %481 = vector.load %arg13[%c32_98, %c0_99] : memref<64x32xf32, #tpu.memory_space<vmem>>, vector<8x32xf32>
    tpu.vector_store %arg13[%c32_98, %c0_99], %480 {strides = array<i32>} : memref<64x32xf32, #tpu.memory_space<vmem>>, vector<8x32xf32>,
    %482 = vector.shape_cast %476 : vector<8x1xi1> to vector<8x1xi1>
    %483 = vector.broadcast %482 : vector<8x1xi1> to vector<8x32xi1>
    %484 = arith.select %483, %473, %448 : vector<8x32xi1>, vector<8x32xf32>
    %485 = vector.shape_cast %476 : vector<8x1xi1> to vector<8x1xi1>
    %486 = vector.broadcast %485 : vector<8x1xi1> to vector<8x32xi1>
    %487 = arith.select %486, %471, %451 : vector<8x32xi1>, vector<8x32xf32>
    %488 = vector.extract_strided_slice %303 {offsets = [40, 0], sizes = [8, 128], strides = [1, 1]} : vector<64x128xf32> to vector<8x128xf32>
    %489 = arith.truncf %484 : vector<8x32xf32> to vector<8x32xbf16>
    %cst_100 = arith.constant dense<0.000000e+00> : vector<8x128xf32>
    %490 = tpu.matmul %489, %299, %cst_100 {dimension_numbers = #tpu.dot_dimension_numbers<[1], [0], [0], [1], [0, 0, 1, 1], [], []>} : vector<8x32xbf16>, vector<32x128xbf16>, vector<8x128xf32> -> vector<8x128xf32>
    %491 = arith.addf %488, %490 : vector<8x128xf32>
    %492 = vector.broadcast %300 : vector<1x128xf32> to vector<8x128xf32>
    %493 = arith.addf %491, %492 : vector<8x128xf32>
    %494 = math.tanh %493 : vector<8x128xf32>
    %495 = arith.negf %493 : vector<8x128xf32>
    %496 = math.exp %495 : vector<8x128xf32>
    %cst_101 = arith.constant 1.000000e+00 : f32
    %497 = vector.broadcast %cst_101 : f32 to vector<8x128xf32>
    %498 = arith.addf %497, %496 : vector<8x128xf32>
    %499 = arith.divf %497, %498 : vector<8x128xf32>
    %500 = arith.select %6, %494, %499 : vector<8x128xi1>, vector<8x128xf32>
    %501 = vector.extract_strided_slice %500 {offsets = [0, 0], sizes = [8, 32], strides = [1, 1]} : vector<8x128xf32> to vector<8x32xf32>
    %502 = vector.extract_strided_slice %500 {offsets = [0, 32], sizes = [8, 32], strides = [1, 1]} : vector<8x128xf32> to vector<8x32xf32>
    %503 = vector.extract_strided_slice %500 {offsets = [0, 64], sizes = [8, 32], strides = [1, 1]} : vector<8x128xf32> to vector<8x32xf32>
    %504 = vector.extract_strided_slice %500 {offsets = [0, 96], sizes = [8, 32], strides = [1, 1]} : vector<8x128xf32> to vector<8x32xf32>
    %505 = arith.mulf %502, %487 : vector<8x32xf32>
    %506 = arith.mulf %501, %503 : vector<8x32xf32>
    %507 = arith.addf %505, %506 : vector<8x32xf32>
    %508 = math.tanh %507 : vector<8x32xf32>
    %509 = arith.mulf %504, %508 : vector<8x32xf32>
    %510 = vector.extract_strided_slice %0 {offsets = [40, 0], sizes = [8, 1], strides = [1, 1]} : vector<64x1xf32> to vector<8x1xf32>
    %cst_102 = arith.constant 0.000000e+00 : f32
    %511 = vector.broadcast %cst_102 : f32 to vector<8x1xf32>
    %512 = arith.cmpf ogt, %510, %511 : vector<8x1xf32>
    %cst_103 = arith.constant 0.000000e+00 : f32
    %513 = vector.shape_cast %512 : vector<8x1xi1> to vector<8x1xi1>
    %514 = vector.broadcast %513 : vector<8x1xi1> to vector<8x32xi1>
    %515 = vector.broadcast %cst_103 : f32 to vector<8x32xf32>
    %516 = arith.select %514, %509, %515 : vector<8x32xi1>, vector<8x32xf32>
    %c40_104 = arith.constant 40 : index
    %c0_105 = arith.constant 0 : index
    %517 = vector.load %arg13[%c40_104, %c0_105] : memref<64x32xf32, #tpu.memory_space<vmem>>, vector<8x32xf32>
    tpu.vector_store %arg13[%c40_104, %c0_105], %516 {strides = array<i32>} : memref<64x32xf32, #tpu.memory_space<vmem>>, vector<8x32xf32>,
    %518 = vector.shape_cast %512 : vector<8x1xi1> to vector<8x1xi1>
    %519 = vector.broadcast %518 : vector<8x1xi1> to vector<8x32xi1>
    %520 = arith.select %519, %509, %484 : vector<8x32xi1>, vector<8x32xf32>
    %521 = vector.shape_cast %512 : vector<8x1xi1> to vector<8x1xi1>
    %522 = vector.broadcast %521 : vector<8x1xi1> to vector<8x32xi1>
    %523 = arith.select %522, %507, %487 : vector<8x32xi1>, vector<8x32xf32>
    %524 = vector.extract_strided_slice %303 {offsets = [48, 0], sizes = [8, 128], strides = [1, 1]} : vector<64x128xf32> to vector<8x128xf32>
    %525 = arith.truncf %520 : vector<8x32xf32> to vector<8x32xbf16>
    %cst_106 = arith.constant dense<0.000000e+00> : vector<8x128xf32>
    %526 = tpu.matmul %525, %299, %cst_106 {dimension_numbers = #tpu.dot_dimension_numbers<[1], [0], [0], [1], [0, 0, 1, 1], [], []>} : vector<8x32xbf16>, vector<32x128xbf16>, vector<8x128xf32> -> vector<8x128xf32>
    %527 = arith.addf %524, %526 : vector<8x128xf32>
    %528 = vector.broadcast %300 : vector<1x128xf32> to vector<8x128xf32>
    %529 = arith.addf %527, %528 : vector<8x128xf32>
    %530 = math.tanh %529 : vector<8x128xf32>
    %531 = arith.negf %529 : vector<8x128xf32>
    %532 = math.exp %531 : vector<8x128xf32>
    %cst_107 = arith.constant 1.000000e+00 : f32
    %533 = vector.broadcast %cst_107 : f32 to vector<8x128xf32>
    %534 = arith.addf %533, %532 : vector<8x128xf32>
    %535 = arith.divf %533, %534 : vector<8x128xf32>
    %536 = arith.select %6, %530, %535 : vector<8x128xi1>, vector<8x128xf32>
    %537 = vector.extract_strided_slice %536 {offsets = [0, 0], sizes = [8, 32], strides = [1, 1]} : vector<8x128xf32> to vector<8x32xf32>
    %538 = vector.extract_strided_slice %536 {offsets = [0, 32], sizes = [8, 32], strides = [1, 1]} : vector<8x128xf32> to vector<8x32xf32>
    %539 = vector.extract_strided_slice %536 {offsets = [0, 64], sizes = [8, 32], strides = [1, 1]} : vector<8x128xf32> to vector<8x32xf32>
    %540 = vector.extract_strided_slice %536 {offsets = [0, 96], sizes = [8, 32], strides = [1, 1]} : vector<8x128xf32> to vector<8x32xf32>
    %541 = arith.mulf %538, %523 : vector<8x32xf32>
    %542 = arith.mulf %537, %539 : vector<8x32xf32>
    %543 = arith.addf %541, %542 : vector<8x32xf32>
    %544 = math.tanh %543 : vector<8x32xf32>
    %545 = arith.mulf %540, %544 : vector<8x32xf32>
    %546 = vector.extract_strided_slice %0 {offsets = [48, 0], sizes = [8, 1], strides = [1, 1]} : vector<64x1xf32> to vector<8x1xf32>
    %cst_108 = arith.constant 0.000000e+00 : f32
    %547 = vector.broadcast %cst_108 : f32 to vector<8x1xf32>
    %548 = arith.cmpf ogt, %546, %547 : vector<8x1xf32>
    %cst_109 = arith.constant 0.000000e+00 : f32
    %549 = vector.shape_cast %548 : vector<8x1xi1> to vector<8x1xi1>
    %550 = vector.broadcast %549 : vector<8x1xi1> to vector<8x32xi1>
    %551 = vector.broadcast %cst_109 : f32 to vector<8x32xf32>
    %552 = arith.select %550, %545, %551 : vector<8x32xi1>, vector<8x32xf32>
    %c48_110 = arith.constant 48 : index
    %c0_111 = arith.constant 0 : index
    %553 = vector.load %arg13[%c48_110, %c0_111] : memref<64x32xf32, #tpu.memory_space<vmem>>, vector<8x32xf32>
    tpu.vector_store %arg13[%c48_110, %c0_111], %552 {strides = array<i32>} : memref<64x32xf32, #tpu.memory_space<vmem>>, vector<8x32xf32>,
    %554 = vector.shape_cast %548 : vector<8x1xi1> to vector<8x1xi1>
    %555 = vector.broadcast %554 : vector<8x1xi1> to vector<8x32xi1>
    %556 = arith.select %555, %545, %520 : vector<8x32xi1>, vector<8x32xf32>
    %557 = vector.shape_cast %548 : vector<8x1xi1> to vector<8x1xi1>
    %558 = vector.broadcast %557 : vector<8x1xi1> to vector<8x32xi1>
    %559 = arith.select %558, %543, %523 : vector<8x32xi1>, vector<8x32xf32>
    %560 = vector.extract_strided_slice %303 {offsets = [56, 0], sizes = [8, 128], strides = [1, 1]} : vector<64x128xf32> to vector<8x128xf32>
    %561 = arith.truncf %556 : vector<8x32xf32> to vector<8x32xbf16>
    %cst_112 = arith.constant dense<0.000000e+00> : vector<8x128xf32>
    %562 = tpu.matmul %561, %299, %cst_112 {dimension_numbers = #tpu.dot_dimension_numbers<[1], [0], [0], [1], [0, 0, 1, 1], [], []>} : vector<8x32xbf16>, vector<32x128xbf16>, vector<8x128xf32> -> vector<8x128xf32>
    %563 = arith.addf %560, %562 : vector<8x128xf32>
    %564 = vector.broadcast %300 : vector<1x128xf32> to vector<8x128xf32>
    %565 = arith.addf %563, %564 : vector<8x128xf32>
    %566 = math.tanh %565 : vector<8x128xf32>
    %567 = arith.negf %565 : vector<8x128xf32>
    %568 = math.exp %567 : vector<8x128xf32>
    %cst_113 = arith.constant 1.000000e+00 : f32
    %569 = vector.broadcast %cst_113 : f32 to vector<8x128xf32>
    %570 = arith.addf %569, %568 : vector<8x128xf32>
    %571 = arith.divf %569, %570 : vector<8x128xf32>
    %572 = arith.select %6, %566, %571 : vector<8x128xi1>, vector<8x128xf32>
    %573 = vector.extract_strided_slice %572 {offsets = [0, 0], sizes = [8, 32], strides = [1, 1]} : vector<8x128xf32> to vector<8x32xf32>
    %574 = vector.extract_strided_slice %572 {offsets = [0, 32], sizes = [8, 32], strides = [1, 1]} : vector<8x128xf32> to vector<8x32xf32>
    %575 = vector.extract_strided_slice %572 {offsets = [0, 64], sizes = [8, 32], strides = [1, 1]} : vector<8x128xf32> to vector<8x32xf32>
    %576 = vector.extract_strided_slice %572 {offsets = [0, 96], sizes = [8, 32], strides = [1, 1]} : vector<8x128xf32> to vector<8x32xf32>
    %577 = arith.mulf %574, %559 : vector<8x32xf32>
    %578 = arith.mulf %573, %575 : vector<8x32xf32>
    %579 = arith.addf %577, %578 : vector<8x32xf32>
    %580 = math.tanh %579 : vector<8x32xf32>
    %581 = arith.mulf %576, %580 : vector<8x32xf32>
    %582 = vector.extract_strided_slice %0 {offsets = [56, 0], sizes = [8, 1], strides = [1, 1]} : vector<64x1xf32> to vector<8x1xf32>
    %cst_114 = arith.constant 0.000000e+00 : f32
    %583 = vector.broadcast %cst_114 : f32 to vector<8x1xf32>
    %584 = arith.cmpf ogt, %582, %583 : vector<8x1xf32>
    %cst_115 = arith.constant 0.000000e+00 : f32
    %585 = vector.shape_cast %584 : vector<8x1xi1> to vector<8x1xi1>
    %586 = vector.broadcast %585 : vector<8x1xi1> to vector<8x32xi1>
    %587 = vector.broadcast %cst_115 : f32 to vector<8x32xf32>
    %588 = arith.select %586, %581, %587 : vector<8x32xi1>, vector<8x32xf32>
    %c56_116 = arith.constant 56 : index
    %c0_117 = arith.constant 0 : index
    %589 = vector.load %arg13[%c56_116, %c0_117] : memref<64x32xf32, #tpu.memory_space<vmem>>, vector<8x32xf32>
    tpu.vector_store %arg13[%c56_116, %c0_117], %588 {strides = array<i32>} : memref<64x32xf32, #tpu.memory_space<vmem>>, vector<8x32xf32>,
    %c0_118 = arith.constant 0 : index
    %c0_119 = arith.constant 0 : index
    %590 = vector.load %arg13[%c0_118, %c0_119] : memref<64x32xf32, #tpu.memory_space<vmem>>, vector<64x32xf32>
    %591 = arith.truncf %590 : vector<64x32xf32> to vector<64x32xbf16>
    %c0_120 = arith.constant 0 : index
    %c0_121 = arith.constant 0 : index
    %592 = vector.load %arg10[%c0_120, %c0_121] : memref<32x128xbf16, #tpu.memory_space<vmem>>, vector<32x128xbf16>
    %cst_122 = arith.constant dense<0.000000e+00> : vector<64x128xf32>
    %593 = tpu.matmul %591, %592, %cst_122 {dimension_numbers = #tpu.dot_dimension_numbers<[1], [0], [0], [1], [0, 0, 1, 1], [], []>} : vector<64x32xbf16>, vector<32x128xbf16>, vector<64x128xf32> -> vector<64x128xf32>
    %c0_123 = arith.constant 0 : index
    %c0_124 = arith.constant 0 : index
    %594 = vector.load %arg11[%c0_123, %c0_124] : memref<1x128xf32, #tpu.memory_space<vmem>>, vector<1x128xf32>
    %595 = vector.broadcast %594 : vector<1x128xf32> to vector<64x128xf32>
    %596 = arith.addf %593, %595 : vector<64x128xf32>
    %597 = arith.negf %596 : vector<64x128xf32>
    %598 = math.exp %597 : vector<64x128xf32>
    %cst_125 = arith.constant 1.000000e+00 : f32
    %599 = vector.broadcast %cst_125 : f32 to vector<64x128xf32>
    %600 = arith.addf %599, %598 : vector<64x128xf32>
    %601 = arith.divf %599, %600 : vector<64x128xf32>
    %c0_126 = arith.constant 0 : index
    %c0_127 = arith.constant 0 : index
    %602 = vector.load %arg12[%c0_126, %c0_127] : memref<64x128xf32, #tpu.memory_space<vmem>>, vector<64x128xf32>
    tpu.vector_store %arg12[%c0_126, %c0_127], %601 {strides = array<i32>} : memref<64x128xf32, #tpu.memory_space<vmem>>, vector<64x128xf32>,
    return
  }
}

</mosaic_0001>

<bundles_post_ra>
// kernel: tpu_custom_call.1
= control target key start
LH: loop header
LB: loop body
LE: loop exit
PB: predicated region body
PF: predicated region fallthrough
CT: control target
= control target key end

     0   :  { %17 = vsyncpa [#allocation4], 0  ;;  %s3408_s0 = inlined_call_operand.hbm [shape: bf16[64,128], index: 0, kind: input, shape index: {}]   ;;  %s3409_s1 = inlined_call_operand.vmem [shape: f32[64,1], index: 1, kind: input, shape index: {}]   ;;  %s3410_s2 = inlined_call_operand.vmem [shape: f32[2,8,32], index: 2, kind: input, shape index: {}]   ;;  %s3411_s3 = inlined_call_operand.hbm [shape: f32[2,8,32], index: 3, kind: input, shape index: {}]   ;;  %s3412_s4 = inlined_call_operand.vmem [shape: bf16[128,128], index: 4, kind: input, shape index: {}]   ;;  %s3413_s5 = inlined_call_operand.hbm [shape: bf16[32,128], index: 5, kind: input, shape index: {}]   ;;  %s3414_s6 = inlined_call_operand.vmem [shape: f32[1,128], index: 6, kind: input, shape index: {}]   ;;  %s3415_s7 = inlined_call_operand.hbm [shape: bf16[32,128], index: 7, kind: input, shape index: {}]   ;;  %s3416_s8 = inlined_call_operand.hbm [shape: bf16[32,128], index: 8, kind: input, shape index: {}]   ;;  %s3417_s9 = inlined_call_operand.vmem [shape: f32[1,128], index: 9, kind: input, shape index: {}]   ;;  %s3418_s10 = inlined_call_operand.vmem [shape: bf16[32,128], index: 10, kind: input, shape index: {}]   ;;  %s3419_s11 = inlined_call_operand.vmem [shape: f32[1,128], index: 11, kind: input, shape index: {}]   ;;  %s3420_s12 = inlined_call_operand.hbm [shape: f32[64,128], index: 12, kind: output, shape index: {}]  }
   0x1   :  { %18 = vsyncpa [#allocation7], 0 }
   0x2   :  { %19 = vsyncpa [#allocation10], 0 }
   0x3   :  { %20 = vsyncpa [#allocation5], 0  ;;  %s2653_s21 = smov [#allocation6]   ;;  %s2513_s25 = scalar_lea.hbm %s3411_s3, 256 }
   0x4   :  { %s42_s22 = sshll.u32 %s2653_s21, 4  ;;  %p2514_p0 = scmp.ne.s32.totalorder %s3411_s3, %s2513_s25  ;;  %s43_s22 = int_to_ptr.vmem [resolvable:$true] %s42_s22 }
   0x5   :  { %p2517_p1 = scmp.lt.u32.totalorder %s2513_s25, %s3411_s3 }
   0x7   :  { %p2519_p2 = pnand %p2517_p1, %p2514_p0 }
   0x9   :  { %2522 = shalt.err (!%p2519_p2)
}
   0xa   :  { %s2523_s30 = scalar_lea.vmem %s43_s22, 256  ;;  %p2528_p4 = scmp.lt.s32.totalorder %s43_s22, %s43_s22 }
   0xb   :  { %p2524_p3 = scmp.ne.s32.totalorder %s43_s22, %s2523_s30  ;;  %p2529_p5 = scmp.lt.s32.totalorder %s2523_s30, %s2523_s30 }
   0xd   :  { %p2530_p6 = por %p2529_p5, %p2528_p4 }
   0xf   :  { %p2531_p7 = pnand %p2530_p6, %p2524_p3 }
  0x11   :  { %2534 = shalt.err (!%p2531_p7)
}
  0x12   :  { %s2654_s13 = smov 128   ;;  %s2655_s14 = smov 8  }
  0x13   :  { %48 = dma.hbm_to_vmem [thread:$0]  %s3411_s3, 256, %s43_s22, [#allocation7], %s2654_s13, %s2654_s13, %s2655_s14  }
  0x14   :  { %s2656_s17 = smov [#allocation9]   ;;  %s2657_s19 = smov [#allocation3]  }
  0x15   :  { %s70_s18 = sshll.u32 %s2656_s17, 4  ;;  %s26_s20 = sshll.u32 %s2657_s19, 4  ;;  %s71_s18 = int_to_ptr.vmem [resolvable:$true] %s70_s18  ;;  %s27_s20 = int_to_ptr.vmem [resolvable:$true] %s26_s20 }
  0x16   :  { %s2535_s24 = scalar_lea.hbm %s3415_s7, 256 }
  0x17   :  { %p2536_p8 = scmp.ne.s32.totalorder %s3415_s7, %s2535_s24  ;;  %p2539_p9 = scmp.lt.u32.totalorder %s2535_s24, %s3415_s7 }
  0x19   :  { %p2541_p10 = pnand %p2539_p9, %p2536_p8 }
  0x1b   :  { %2544 = shalt.err (!%p2541_p10)
}
  0x1c   :  { %s2545_s3 = scalar_lea.vmem %s71_s18, 256  ;;  %p2550_p12 = scmp.lt.s32.totalorder %s71_s18, %s71_s18 }
  0x1d   :  { %p2546_p11 = scmp.ne.s32.totalorder %s71_s18, %s2545_s3  ;;  %p2551_p13 = scmp.lt.s32.totalorder %s2545_s3, %s2545_s3 }
  0x1f   :  { %p2552_p0 = por %p2551_p13, %p2550_p12 }
  0x21   :  { %p2553_p1 = pnand %p2552_p0, %p2546_p11 }
  0x23   :  { %2556 = shalt.err (!%p2553_p1)
}
  0x24   :  { %s2658_s22 = smov 64   ;;  %s2659_s29 = smov 4  }
  0x25   :  { %76 = dma.hbm_to_vmem [thread:$0]  %s3415_s7, 256, %s71_s18, [#allocation10], %s2658_s22, %s2658_s22, %s2659_s29  }
  0x26   :  { %s2557_s19 = scalar_lea.hbm %s3408_s0, 512 }
  0x27   :  { %p2558_p2 = scmp.ne.s32.totalorder %s3408_s0, %s2557_s19  ;;  %p2561_p3 = scmp.lt.u32.totalorder %s2557_s19, %s3408_s0 }
  0x29   :  { %p2563_p4 = pnand %p2561_p3, %p2558_p2 }
  0x2b   :  { %2566 = shalt.err (!%p2563_p4)
}
  0x2c   :  { %s2567_s26 = scalar_lea.vmem %s27_s20, 512  ;;  %p2572_p6 = scmp.lt.s32.totalorder %s27_s20, %s27_s20 }
  0x2d   :  { %p2568_p5 = scmp.ne.s32.totalorder %s27_s20, %s2567_s26  ;;  %p2573_p7 = scmp.lt.s32.totalorder %s2567_s26, %s2567_s26 }
  0x2f   :  { %p2574_p8 = por %p2573_p7, %p2572_p6 }
  0x31   :  { %p2575_p9 = pnand %p2574_p8, %p2568_p5 }
  0x33   :  { %2578 = shalt.err (!%p2575_p9)
}
  0x34   :  { %32 = dma.hbm_to_vmem [thread:$0]  %s3408_s0, 512, %s27_s20, [#allocation4], %s2658_s22, %s2658_s22, %s2659_s29  }
  0x35   :  { %s2660_s27 = smov [#allocation8]   ;;  %s2661_s3 = smov [#allocation11]  }
  0x36   :  { %s56_s28 = sshll.u32 %s2660_s27, 4  ;;  %s82_s30 = sshll.u32 %s2661_s3, 4  ;;  %s57_s28 = int_to_ptr.vmem [resolvable:$true] %s56_s28  ;;  %s83_s30 = int_to_ptr.vmem [resolvable:$true] %s82_s30 }
  0x37   :  { %s2579_s17 = scalar_lea.hbm %s3413_s5, 256 }
  0x38   :  { %p2580_p10 = scmp.ne.s32.totalorder %s3413_s5, %s2579_s17  ;;  %p2583_p11 = scmp.lt.u32.totalorder %s2579_s17, %s3413_s5 }
  0x3a   :  { %p2585_p12 = pnand %p2583_p11, %p2580_p10 }
  0x3c   :  { %2588 = shalt.err (!%p2585_p12)
}
  0x3d   :  { %s2589_s0 = scalar_lea.vmem %s57_s28, 256  ;;  %p2594_p0 = scmp.lt.s32.totalorder %s57_s28, %s57_s28 }
  0x3e   :  { %p2590_p13 = scmp.ne.s32.totalorder %s57_s28, %s2589_s0  ;;  %p2595_p1 = scmp.lt.s32.totalorder %s2589_s0, %s2589_s0 }
  0x40   :  { %p2596_p2 = por %p2595_p1, %p2594_p0 }
  0x42   :  { %p2597_p3 = pnand %p2596_p2, %p2590_p13 }
  0x44   :  { %2600 = shalt.err (!%p2597_p3)
}
  0x45   :  { %62 = dma.hbm_to_vmem [thread:$0]  %s3413_s5, 256, %s57_s28, [#allocation7], %s2658_s22, %s2658_s22, %s2659_s29  }
  0x46   :  { %s2601_s18 = scalar_lea.hbm %s3416_s8, 256 }
  0x47   :  { %p2602_p4 = scmp.ne.s32.totalorder %s3416_s8, %s2601_s18  ;;  %p2605_p5 = scmp.lt.u32.totalorder %s2601_s18, %s3416_s8 }
  0x49   :  { %p2607_p6 = pnand %p2605_p5, %p2602_p4 }
  0x4b   :  { %2610 = shalt.err (!%p2607_p6)
}
  0x4c   :  { %s2611_s17 = scalar_lea.vmem %s83_s30, 256  ;;  %p2616_p8 = scmp.lt.s32.totalorder %s83_s30, %s83_s30 }
  0x4d   :  { %p2612_p7 = scmp.ne.s32.totalorder %s83_s30, %s2611_s17  ;;  %p2617_p9 = scmp.lt.s32.totalorder %s2611_s17, %s2611_s17 }
  0x4f   :  { %p2618_p10 = por %p2617_p9, %p2616_p8 }
  0x51   :  { %p2619_p11 = pnand %p2618_p10, %p2612_p7 }
  0x53   :  { %2622 = shalt.err (!%p2619_p11)
}
  0x54   :  { %88 = dma.hbm_to_vmem [thread:$0]  %s3416_s8, 256, %s83_s30, [#allocation10], %s2658_s22, %s2658_s22, %s2659_s29  }
  0x55   :  { %2645 = dma.done.wait [#allocation4], 512  }
  0x56   :  { %2646 = vsyncadd [#allocation4], 4294966784 }
  0x57   :  { %2647 = dma.done.wait [#allocation7], 512  }
  0x58   :  { %2648 = vsyncadd [#allocation7], 4294966784 }
  0x59   :  { %2649 = dma.done.wait [#allocation10], 512  }
  0x5a   :  { %2650 = vsyncadd [#allocation10], 4294966784  ;;  %v2662_v0 = vmov 0.0   ;;  %vm2663_vm0 = vmmov 0   ;;  %v2333_v1 = vld [vmem:[%s3412_s4] sm:$0xff]   ;;  %v2334_v2 = vld [vmem:[%s3412_s4 + $0x8] sm:$0xff]   ;;  %v119_v28 = vlaneseq }
  0x5b   :  { %2164 = vmatprep.subr.bf16.mxu1 %v2662_v0  ;;  %2168 = vmatprep.mubr.msk.bf16.mxu1 %vm2663_vm0, %v2662_v0  ;;  %v2335_v3 = vld [vmem:[%s3412_s4 + $0x10] sm:$0xff]   ;;  %v2336_v5 = vld [vmem:[%s3412_s4 + $0x18] sm:$0xff]   ;;  %v2832_v7 = vld [vmem:[%s3410_s2] sm:$0xff]  ;;  %vm305_vm1 = vcmask 261120   ;;  %v2664_v31 = vmov 0   ;;  %s2666_s21 = smov 96  }
  0x5c   :  { %2140 = vmatprep.subr.bf16.mxu0 %v2333_v1  ;;  %v2820_v4 = vld [vmem:[#allocation8] sm:$0xff]   ;;  %v2826_v6 = vld [vmem:[#allocation8 + $0x8] sm:$0xff]   ;;  %v292_v8 = vpack.c.bf16 %v2832_v7, %v2832_v7  ;;  %v2343_v9 = vld [vmem:[#allocation3] sm:$0xff]   ;;  %v120_v30 = vand.u32 127, %v119_v28  ;;  %2331 = vset.pattern.permute.xlu1 %v2664_v31 }
  0x5d   :  { %2141 = vmatpush3.bf16.msra.mxu0 %v2333_v1  ;;  %2165 = vmatpush3.bf16.msra.mxu1 %v2820_v4  ;;  %v2337_v10 = vld [vmem:[%s3412_s4 + $0x20] sm:$0xff]   ;;  %v2338_v11 = vld [vmem:[%s3412_s4 + $0x28] sm:$0xff]   ;;  %v2340_v12 = vld [vmem:[%s3412_s4 + $0x30] sm:$0xff]  }
  0x5e   :  { %2142 = vmatprep.subr.bf16.mxu0 %v2334_v2  ;;  %2166 = vmatprep.subr.bf16.mxu1 %v2662_v0  ;;  %v2342_v13 = vld [vmem:[%s3412_s4 + $0x38] sm:$0xff]   ;;  %v2344_v14 = vld [vmem:[#allocation3 + $0x8] sm:$0xff]   ;;  %v2867_v20 = vld [vmem:[%s3414_s6] ss:$0 sm:$0xff]  ;;  %vm121_vm2 = vcmp.ge.s32.totalorder %v120_v30, 64  ;;  %vm122_vm3 = vcmp.lt.s32.totalorder %v120_v30, 96 }
  0x5f   :  { %2156 = vmatprep.mubr.bf16.mxu0 %v2343_v9  ;;  %2332 = vset.pattern.permute.xlu0 %v2664_v31  ;;  %vm2874_vm4 = vmand %vm121_vm2, %vm122_vm3  ;;  %v291_v36 = vld [vmem:[#allocation6] sm:$0xff]  ;;  %s2665_s6 = smov 32   ;;  %v112_v62 = vld [vmem:[%s3409_s1 + $0x8] sm:$0xff] }
  0x60   :  { %v111_v37 = vld [vmem:[%s3409_s1] sm:$0xff]  ;;  %vm478_vm7 = vcmp.gt.f32.partialorder %v112_v62, 0.0 }
  0x61   :  { %2143 = vmatpush3.bf16.msra.mxu0 %v2334_v2  ;;  %2167 = vmatpush3.bf16.msra.mxu1 %v2826_v6  ;;  %vm386_vm5 = vcmp.gt.f32.partialorder %v111_v37, 0.0 }
  0x62   :  { %2144 = vmatprep.subr.bf16.mxu0 %v2335_v3  ;;  %2172 = vmatprep.subr.bf16.mxu1 %v2662_v0  ;;  %v387_v40 = vsel %vm386_vm5, 1, %v2664_v31 }
  0x64   :  { %2169 = vmatmul.mubr.msk.bf16.vlgmr.msra.gmra.mrb[0].mxu1 %vm305_vm1, %v292_v8 }
  0x65   :  { %2145 = vmatpush3.bf16.msra.mxu0 %v2335_v3  ;;  %2173 = vmatpush3.bf16.msra.mxu1 %v2820_v4  ;;  %v479_v3 = vsel %vm478_vm7, 1, %v2664_v31 }
  0x66   :  { %2146 = vmatprep.subr.bf16.mxu0 %v2336_v5  ;;  %2174 = vmatprep.subr.bf16.mxu1 %v2662_v0 }
  0x67   :  { %2176 = vmatprep.mubr.msk.bf16.mxu1 %vm2663_vm0, %v2662_v0 }
  0x69   :  { %2147 = vmatpush3.bf16.msra.mxu0 %v2336_v5  ;;  %2175 = vmatpush3.bf16.msra.mxu1 %v2826_v6 }
  0x6a   :  { %2148 = vmatprep.subr.bf16.mxu0 %v2337_v10  ;;  %2180 = vmatprep.subr.bf16.mxu1 %v2662_v0 }
  0x6d   :  { %2149 = vmatpush3.bf16.msra.mxu0 %v2337_v10 }
  0x6e   :  { %2150 = vmatprep.subr.bf16.mxu0 %v2338_v11 }
  0x71   :  { %2151 = vmatpush3.bf16.msra.mxu0 %v2338_v11 }
  0x72   :  { %2152 = vmatprep.subr.bf16.mxu0 %v2340_v12 }
  0x75   :  { %2153 = vmatpush3.bf16.msra.mxu0 %v2340_v12 }
  0x76   :  { %2154 = vmatprep.subr.bf16.mxu0 %v2342_v13 }
  0x79   :  { %2155 = vmatpush3.bf16.msra.mxu0 %v2342_v13 }
  0x7a   :  { %2204 = vmatprep.subr.bf16.mxu0 %v2662_v0 }
  0x7c   :  { %2157 = vmatmul.mubr.bf16.vlgmr.msra.gmra.mrb[0].mxu0 %v2344_v14 }
  0x7d   :  { %2205 = vmatpush3.bf16.msra.mxu0 %v2820_v4 }
  0x7e   :  { %2206 = vmatprep.subr.bf16.mxu0 %v2662_v0 }
  0x81   :  { %2207 = vmatpush3.bf16.msra.mxu0 %v2826_v6 }
  0x82   :  { %2220 = vmatprep.subr.bf16.mxu0 %v2662_v0 }
 0x137   :  { %v343_v15 = vpop.f32.mrb[0].mxu1 }
 0x138   :  { %v2170_v16 = vpop.f32.mrb[1].mxu1 }
 0x139   :  { %v346_v17 = vpop.f32.mrb[2].mxu1 }
 0x13a   :  { %v2171_v18 = vpop.f32.mrb[3].mxu1 }
 0x14f   :  { %v2862_v19 = vpop.f32.mrb[0].mxu0 }
 0x150   :  { %v259_v21 = vpop.f32.mrb[1].mxu0 }
 0x151   :  { %v349_v22 = vadd.f32 %v343_v15, %v259_v21  ;;  %v2869_v23 = vpop.f32.mrb[2].mxu0 }
 0x152   :  { %v262_v24 = vpop.f32.mrb[3].mxu0 }
 0x153   :  { %v356_v25 = vadd.f32 %v2867_v20, %v349_v22 }
 0x155   :  { %v2012_v26 = vmul.f32 -1.442695, %v356_v25 }
 0x157   :  { %2353 = vpow2.f32 %v2012_v26 }
 0x158   :  { %2355 = vtanh.f32 %v356_v25 }
 0x161   :  { %v2354_v27 = vpop.eup %2353 }
 0x162   :  { %v361_v29 = vadd.f32 1.0, %v2354_v27  ;;  %v2356_v33 = vpop.eup %2355 }
 0x164   :  { %2357 = vrcp.f32 %v361_v29 }
 0x16e   :  { %v2358_v34 = vpop.eup %2357 }
 0x16f   :  { %v364_v35 = vsel %vm2874_vm4, %v2356_v33, %v2358_v34  ;;  %v113_v33 = vld [vmem:[%s3409_s1 + $0x10] sm:$0xff] }
 0x170   :  { %371 = vrot.lane.b32.xlu0 %v364_v35, %s2658_s22  ;;  %vm566_vm9 = vcmp.gt.f32.partialorder %v113_v33, 0.0 }
 0x174   :  { %366 = vrot.lane.b32.xlu0 %v291_v36, %s2665_s6  ;;  %v567_v36 = vsel %vm566_vm9, 1, %v2664_v31 }
 0x1e2   :  { %v372_v38 = vpop.permute.xlu0 %371 }
 0x1e3   :  { %v374_v39 = vmul.f32 %v372_v38, %v364_v35 }
 0x1e5   :  { %376 = vrot.lane.b32.xlu1 %v374_v39, %s2665_s6 }
 0x1e6   :  { %v367_v41 = vpop.permute.xlu0 %366 }
 0x1e7   :  { %v369_v42 = vmul.f32 %v367_v41, %v364_v35 }
 0x1e9   :  { %389 = vperm.xlu1 %2331, %v387_v40  }
 0x1ed   :  { %399 = vrot.lane.b32.xlu1 %v2832_v7, %s2666_s21 }
 0x257   :  { %v377_v43 = vpop.permute.xlu1 %376 }
 0x258   :  { %v379_v44 = vadd.f32 %v377_v43, %v369_v42 }
 0x25a   :  { %2359 = vtanh.f32 %v379_v44 }
 0x264   :  { %v2360_v45 = vpop.eup %2359 }
 0x265   :  { %382 = vrot.lane.b32.xlu0 %v2360_v45, %s2658_s22 }
 0x268   :  { %v2890_v46 = vpop.permute.xlu1 %389 }
 0x269   :  { %vm391_vm6 = vcmp.eq.s32.totalorder %v2890_v46, 1 }
 0x26a   :  { %v403_v8 = vsel %vm391_vm6, %v379_v44, %v367_v41 }
 0x26c   :  { %v400_v48 = vpop.permute.xlu1 %399 }
 0x2d7   :  { %v383_v47 = vpop.permute.xlu0 %382 }
 0x2d8   :  { %v2892_v49 = vmul.f32 %v383_v47, %v364_v35 }
 0x2da   :  { %v402_v50 = vsel %vm391_vm6, %v2892_v49, %v400_v48 }
 0x2db   :  { %v404_v51 = vpack.c.bf16 %v402_v50, %v402_v50 }
 0x2dd   :  { %406 = vrot.lane.b32.xlu0 %v404_v51, %s2665_s6 }
 0x34f   :  { %v407_v52 = vpop.permute.xlu0 %406 }
 0x350   :  { %2177 = vmatmul.mubr.msk.bf16.vlgmr.msra.gmra.mrb[4].mxu1 %vm305_vm1, %v407_v52 }
 0x351   :  { %2181 = vmatpush3.bf16.msra.mxu1 %v2820_v4  ;;  %2184 = vmatprep.mubr.msk.bf16.mxu1 %vm2663_vm0, %v2662_v0 }
 0x352   :  { %2182 = vmatprep.subr.bf16.mxu1 %v2662_v0 }
 0x355   :  { %2183 = vmatpush3.bf16.msra.mxu1 %v2826_v6 }
 0x356   :  { %2188 = vmatprep.subr.bf16.mxu1 %v2662_v0 }
 0x423   :  { %v445_v53 = vpop.f32.mrb[4].mxu1 }
 0x424   :  { %v451_v54 = vadd.f32 %v445_v53, %v262_v24  ;;  %v2178_v55 = vpop.f32.mrb[5].mxu1 }
 0x425   :  { %v448_v56 = vpop.f32.mrb[6].mxu1 }
 0x426   :  { %v452_v57 = vadd.f32 %v2867_v20, %v451_v54  ;;  %v2179_v58 = vpop.f32.mrb[7].mxu1 }
 0x428   :  { %v2014_v59 = vmul.f32 -1.442695, %v452_v57 }
 0x42a   :  { %2361 = vpow2.f32 %v2014_v59 }
 0x42b   :  { %2363 = vtanh.f32 %v452_v57 }
 0x434   :  { %v2362_v60 = vpop.eup %2361 }
 0x435   :  { %v457_v61 = vadd.f32 1.0, %v2362_v60  ;;  %v2364_v63 = vpop.eup %2363 }
 0x437   :  { %2365 = vrcp.f32 %v457_v61  ;;  %v114_v61 = vld [vmem:[%s3409_s1 + $0x18] sm:$0xff] }
 0x438   :  { %vm654_vm11 = vcmp.gt.f32.partialorder %v114_v61, 0.0 }
 0x441   :  { %v2366_v1 = vpop.eup %2365 }
 0x442   :  { %v460_v2 = vsel %vm2874_vm4, %v2364_v63, %v2366_v1  ;;  %v655_v1 = vsel %vm654_vm11, 1, %v2664_v31 }
 0x443   :  { %463 = vrot.lane.b32.xlu1 %v460_v2, %s2658_s22  ;;  %v461_v9 = vmul.f32 %v460_v2, %v403_v8 }
 0x447   :  { %481 = vperm.xlu1 %2331, %v479_v3  }
 0x4b5   :  { %v464_v5 = vpop.permute.xlu1 %463 }
 0x4b6   :  { %v466_v7 = vmul.f32 %v464_v5, %v460_v2 }
 0x4b8   :  { %468 = vrot.lane.b32.xlu0 %v466_v7, %s2665_s6 }
 0x4c6   :  { %v2918_v13 = vpop.permute.xlu1 %481 }
 0x4c7   :  { %vm483_vm8 = vcmp.eq.s32.totalorder %v2918_v13, 1 }
 0x52a   :  { %v469_v10 = vpop.permute.xlu0 %468 }
 0x52b   :  { %v471_v11 = vadd.f32 %v469_v10, %v461_v9  ;;  %v2345_v10 = vld [vmem:[#allocation3 + $0x10] sm:$0xff]  }
 0x52c   :  { %2160 = vmatprep.mubr.bf16.mxu0 %v2345_v10 }
 0x52d   :  { %2367 = vtanh.f32 %v471_v11  ;;  %v491_v39 = vsel %vm483_vm8, %v471_v11, %v403_v8  ;;  %v2346_v11 = vld [vmem:[#allocation3 + $0x18] sm:$0xff]  }
 0x52e   :  { %2161 = vmatmul.mubr.bf16.gmra.mrb[4].mxu0 %v2346_v11 }
 0x52f   :  { %2208 = vmatprep.mubr.msk.bf16.mxu0 %vm2663_vm0, %v2662_v0 }
 0x537   :  { %v2368_v12 = vpop.eup %2367 }
 0x538   :  { %474 = vrot.lane.b32.xlu0 %v2368_v12, %s2658_s22 }
 0x5aa   :  { %v475_v14 = vpop.permute.xlu0 %474 }
 0x5ab   :  { %v2920_v15 = vmul.f32 %v475_v14, %v460_v2 }
 0x5ad   :  { %v490_v16 = vsel %vm483_vm8, %v2920_v15, %v402_v50 }
 0x5ae   :  { %v492_v17 = vpack.c.bf16 %v490_v16, %v490_v16 }
 0x5b0   :  { %494 = vrot.lane.b32.xlu1 %v492_v17, %s2665_s6 }
 0x622   :  { %v495_v18 = vpop.permute.xlu1 %494 }
 0x623   :  { %2185 = vmatmul.mubr.msk.bf16.vlgmr.msra.gmra.mrb[8].mxu1 %vm305_vm1, %v495_v18 }
 0x624   :  { %2189 = vmatpush3.bf16.msra.mxu1 %v2820_v4  ;;  %2192 = vmatprep.mubr.msk.bf16.mxu1 %vm2663_vm0, %v2662_v0 }
 0x625   :  { %2190 = vmatprep.subr.bf16.mxu1 %v2662_v0 }
 0x628   :  { %2191 = vmatpush3.bf16.msra.mxu1 %v2826_v6 }
 0x629   :  { %2196 = vmatprep.subr.bf16.mxu1 %v2662_v0 }
 0x6f6   :  { %v533_v21 = vpop.f32.mrb[8].mxu1 }
 0x6f7   :  { %v539_v22 = vadd.f32 %v2862_v19, %v533_v21  ;;  %v2186_v24 = vpop.f32.mrb[9].mxu1 }
 0x6f8   :  { %v536_v25 = vpop.f32.mrb[10].mxu1 }
 0x6f9   :  { %v540_v26 = vadd.f32 %v2867_v20, %v539_v22  ;;  %v2187_v27 = vpop.f32.mrb[11].mxu1  ;;  %v2987_v22 = vpop.f32.mrb[4].mxu0 }
 0x6fa   :  { %v275_v24 = vpop.f32.mrb[5].mxu0 }
 0x6fb   :  { %v2016_v28 = vmul.f32 -1.442695, %v540_v26  ;;  %v2989_v25 = vpop.f32.mrb[6].mxu0 }
 0x6fd   :  { %2369 = vpow2.f32 %v2016_v28 }
 0x6fe   :  { %2371 = vtanh.f32 %v540_v26  ;;  %v278_v26 = vpop.f32.mrb[7].mxu0 }
 0x707   :  { %v2370_v29 = vpop.eup %2369 }
 0x708   :  { %v545_v30 = vadd.f32 1.0, %v2370_v29  ;;  %v2372_v34 = vpop.eup %2371 }
 0x70a   :  { %2373 = vrcp.f32 %v545_v30 }
 0x714   :  { %v2374_v35 = vpop.eup %2373 }
 0x715   :  { %v548_v19 = vsel %vm2874_vm4, %v2372_v34, %v2374_v35 }
 0x716   :  { %551 = vrot.lane.b32.xlu0 %v548_v19, %s2658_s22  ;;  %v549_v40 = vmul.f32 %v548_v19, %v491_v39 }
 0x71a   :  { %569 = vperm.xlu0 %2332, %v567_v36  }
 0x788   :  { %v552_v37 = vpop.permute.xlu0 %551 }
 0x789   :  { %v554_v38 = vmul.f32 %v552_v37, %v548_v19 }
 0x78b   :  { %556 = vrot.lane.b32.xlu1 %v554_v38, %s2665_s6  ;;  %v115_v38 = vld [vmem:[%s3409_s1 + $0x20] sm:$0xff] }
 0x78c   :  { %vm742_vm13 = vcmp.gt.f32.partialorder %v115_v38, 0.0 }
 0x799   :  { %v2947_v44 = vpop.permute.xlu0 %569 }
 0x79a   :  { %vm571_vm10 = vcmp.eq.s32.totalorder %v2947_v44, 1 }
 0x7fd   :  { %v557_v41 = vpop.permute.xlu1 %556 }
 0x7fe   :  { %v559_v42 = vadd.f32 %v557_v41, %v549_v40 }
 0x800   :  { %2375 = vtanh.f32 %v559_v42  ;;  %v579_v5 = vsel %vm571_vm10, %v559_v42, %v491_v39  ;;  %v743_v42 = vsel %vm742_vm13, 1, %v2664_v31 }
 0x80a   :  { %v2376_v43 = vpop.eup %2375 }
 0x80b   :  { %562 = vrot.lane.b32.xlu1 %v2376_v43, %s2658_s22 }
 0x87d   :  { %v563_v45 = vpop.permute.xlu1 %562 }
 0x87e   :  { %v2949_v47 = vmul.f32 %v563_v45, %v548_v19 }
 0x880   :  { %v578_v48 = vsel %vm571_vm10, %v2949_v47, %v490_v16 }
 0x881   :  { %v580_v50 = vpack.c.bf16 %v578_v48, %v578_v48 }
 0x883   :  { %582 = vrot.lane.b32.xlu1 %v580_v50, %s2665_s6 }
 0x8f5   :  { %v583_v51 = vpop.permute.xlu1 %582 }
 0x8f6   :  { %2193 = vmatmul.mubr.msk.bf16.vlgmr.msra.gmra.mrb[12].mxu1 %vm305_vm1, %v583_v51 }
 0x8f7   :  { %2197 = vmatpush3.bf16.msra.mxu1 %v2820_v4  ;;  %2200 = vmatprep.mubr.msk.bf16.mxu1 %vm2663_vm0, %v2662_v0 }
 0x8f8   :  { %2198 = vmatprep.subr.bf16.mxu1 %v2662_v0 }
 0x8fb   :  { %2199 = vmatpush3.bf16.msra.mxu1 %v2826_v6 }
 0x8fc   :  { %2212 = vmatprep.subr.bf16.mxu1 %v2662_v0 }
 0x9c9   :  { %v621_v52 = vpop.f32.mrb[12].mxu1 }
 0x9ca   :  { %v627_v53 = vadd.f32 %v2869_v23, %v621_v52  ;;  %v2194_v54 = vpop.f32.mrb[13].mxu1 }
 0x9cb   :  { %v624_v55 = vpop.f32.mrb[14].mxu1 }
 0x9cc   :  { %v628_v56 = vadd.f32 %v2867_v20, %v627_v53  ;;  %v2195_v57 = vpop.f32.mrb[15].mxu1 }
 0x9ce   :  { %v2018_v58 = vmul.f32 -1.442695, %v628_v56 }
 0x9d0   :  { %2377 = vpow2.f32 %v2018_v58 }
 0x9d1   :  { %2379 = vtanh.f32 %v628_v56 }
 0x9da   :  { %v2378_v59 = vpop.eup %2377 }
 0x9db   :  { %v633_v60 = vadd.f32 1.0, %v2378_v59  ;;  %v2380_v62 = vpop.eup %2379 }
 0x9dd   :  { %2381 = vrcp.f32 %v633_v60 }
 0x9e7   :  { %v2382_v63 = vpop.eup %2381 }
 0x9e8   :  { %v636_v23 = vsel %vm2874_vm4, %v2380_v62, %v2382_v63 }
 0x9e9   :  { %639 = vrot.lane.b32.xlu0 %v636_v23, %s2658_s22  ;;  %v637_v7 = vmul.f32 %v636_v23, %v579_v5 }
 0x9ed   :  { %657 = vperm.xlu0 %2332, %v655_v1  }
 0xa5b   :  { %v640_v2 = vpop.permute.xlu0 %639 }
 0xa5c   :  { %v642_v3 = vmul.f32 %v640_v2, %v636_v23 }
 0xa5e   :  { %644 = vrot.lane.b32.xlu1 %v642_v3, %s2665_s6 }
 0xa6c   :  { %v2978_v14 = vpop.permute.xlu0 %657 }
 0xa6d   :  { %vm659_vm12 = vcmp.eq.s32.totalorder %v2978_v14, 1 }
 0xad0   :  { %v645_v8 = vpop.permute.xlu1 %644 }
 0xad1   :  { %v647_v9 = vadd.f32 %v645_v8, %v637_v7 }
 0xad3   :  { %2383 = vtanh.f32 %v647_v9 }
 0xadd   :  { %v2384_v12 = vpop.eup %2383 }
 0xade   :  { %650 = vrot.lane.b32.xlu1 %v2384_v12, %s2658_s22 }
 0xb50   :  { %v651_v16 = vpop.permute.xlu1 %650 }
 0xb51   :  { %v2980_v17 = vmul.f32 %v651_v16, %v636_v23 }
 0xb53   :  { %v666_v18 = vsel %vm659_vm12, %v2980_v17, %v578_v48  ;;  %v667_v48 = vsel %vm659_vm12, %v647_v9, %v579_v5  ;;  %v116_v5 = vld [vmem:[%s3409_s1 + $0x28] sm:$0xff] }
 0xb54   :  { %v668_v21 = vpack.c.bf16 %v666_v18, %v666_v18  ;;  %vm830_vm15 = vcmp.gt.f32.partialorder %v116_v5, 0.0 }
 0xb55   :  { %v831_v9 = vsel %vm830_vm15, 1, %v2664_v31 }
 0xb56   :  { %670 = vrot.lane.b32.xlu0 %v668_v21, %s2665_s6 }
 0xbc8   :  { %v671_v27 = vpop.permute.xlu0 %670 }
 0xbc9   :  { %2201 = vmatmul.mubr.msk.bf16.vlgmr.msra.gmra.mrb[16].mxu1 %vm305_vm1, %v671_v27 }
 0xbca   :  { %2213 = vmatpush3.bf16.msra.mxu1 %v2820_v4  ;;  %2216 = vmatprep.mubr.msk.bf16.mxu1 %vm2663_vm0, %v2662_v0 }
 0xbcb   :  { %2214 = vmatprep.subr.bf16.mxu1 %v2662_v0 }
 0xbce   :  { %2215 = vmatpush3.bf16.msra.mxu1 %v2826_v6 }
 0xc9c   :  { %v709_v28 = vpop.f32.mrb[16].mxu1 }
 0xc9d   :  { %v715_v29 = vadd.f32 %v709_v28, %v275_v24  ;;  %v2202_v30 = vpop.f32.mrb[17].mxu1 }
 0xc9e   :  { %v712_v33 = vpop.f32.mrb[18].mxu1 }
 0xc9f   :  { %v716_v34 = vadd.f32 %v2867_v20, %v715_v29  ;;  %v2203_v35 = vpop.f32.mrb[19].mxu1 }
 0xca1   :  { %v2020_v19 = vmul.f32 -1.442695, %v716_v34 }
 0xca3   :  { %2385 = vpow2.f32 %v2020_v19 }
 0xca4   :  { %2387 = vtanh.f32 %v716_v34 }
 0xcad   :  { %v2386_v36 = vpop.eup %2385 }
 0xcae   :  { %v721_v37 = vadd.f32 1.0, %v2386_v36  ;;  %v2388_v39 = vpop.eup %2387 }
 0xcb0   :  { %2389 = vrcp.f32 %v721_v37 }
 0xcba   :  { %v2390_v40 = vpop.eup %2389 }
 0xcbb   :  { %v724_v41 = vsel %vm2874_vm4, %v2388_v39, %v2390_v40 }
 0xcbc   :  { %727 = vrot.lane.b32.xlu1 %v724_v41, %s2658_s22  ;;  %v725_v50 = vmul.f32 %v724_v41, %v667_v48 }
 0xcc0   :  { %745 = vperm.xlu1 %2331, %v743_v42   ;;  %v117_v42 = vld [vmem:[%s3409_s1 + $0x30] sm:$0xff] }
 0xcc1   :  { %vm918_vm3 = vcmp.gt.f32.partialorder %v117_v42, 0.0 }
 0xd2e   :  { %v728_v43 = vpop.permute.xlu1 %727 }
 0xd2f   :  { %v730_v45 = vmul.f32 %v728_v43, %v724_v41 }
 0xd31   :  { %732 = vrot.lane.b32.xlu0 %v730_v45, %s2665_s6 }
 0xd3f   :  { %v3009_v54 = vpop.permute.xlu1 %745 }
 0xd40   :  { %vm747_vm14 = vcmp.eq.s32.totalorder %v3009_v54, 1  ;;  %v2351_v54 = vld [vmem:[%s3418_s10] sm:$0xff]  }
 0xda3   :  { %v733_v51 = vpop.permute.xlu0 %732 }
 0xda4   :  { %v735_v52 = vadd.f32 %v733_v51, %v725_v50  ;;  %v392_v50 = vsel %vm391_vm6, %v2892_v49, 0.0  ;;  %v572_v51 = vsel %vm571_vm10, %v2949_v47, 0.0 }
 0xda6   :  { %2391 = vtanh.f32 %v735_v52  ;;  %v755_v12 = vsel %vm747_vm14, %v735_v52, %v667_v48  ;;  %v919_v48 = vsel %vm918_vm3, 1, %v2664_v31 }
 0xdb0   :  { %v2392_v53 = vpop.eup %2391 }
 0xdb1   :  { %738 = vrot.lane.b32.xlu0 %v2392_v53, %s2658_s22 }
 0xe23   :  { %v739_v55 = vpop.permute.xlu0 %738 }
 0xe24   :  { %v3011_v56 = vmul.f32 %v739_v55, %v724_v41 }
 0xe26   :  { %v754_v57 = vsel %vm747_vm14, %v3011_v56, %v666_v18 }
 0xe27   :  { %v756_v58 = vpack.c.bf16 %v754_v57, %v754_v57 }
 0xe29   :  { %758 = vrot.lane.b32.xlu1 %v756_v58, %s2665_s6 }
 0xe9b   :  { %v759_v59 = vpop.permute.xlu1 %758 }
 0xe9c   :  { %2209 = vmatmul.mubr.msk.bf16.vlgmr.msra.gmra.mrb[8].mxu0 %vm305_vm1, %v759_v59 }
 0xe9d   :  { %2221 = vmatpush3.bf16.msra.mxu0 %v2820_v4  ;;  %2224 = vmatprep.mubr.msk.bf16.mxu0 %vm2663_vm0, %v2662_v0 }
 0xe9e   :  { %2222 = vmatprep.subr.bf16.mxu0 %v2662_v0 }
 0xea1   :  { %2223 = vmatpush3.bf16.msra.mxu0 %v2826_v6 }
 0xea2   :  { %2240 = vmatprep.subr.bf16.mxu0 %v2662_v0 }
 0xf6f   :  { %v797_v60 = vpop.f32.mrb[8].mxu0 }
 0xf70   :  { %v803_v61 = vadd.f32 %v797_v60, %v278_v26  ;;  %v2210_v62 = vpop.f32.mrb[9].mxu0 }
 0xf71   :  { %v800_v63 = vpop.f32.mrb[10].mxu0  ;;  %v2348_v62 = vld [vmem:[#allocation9 + $0x8] sm:$0xff]  }
 0xf72   :  { %v804_v23 = vadd.f32 %v2867_v20, %v803_v61  ;;  %v2211_v1 = vpop.f32.mrb[11].mxu0  ;;  %v2347_v61 = vld [vmem:[#allocation9] sm:$0xff]  }
 0xf73   :  { %2228 = vmatprep.subr.bf16.mxu1 %v2347_v61  ;;  %v660_v1 = vsel %vm659_vm12, %v2980_v17, 0.0 }
 0xf74   :  { %v2022_v2 = vmul.f32 -1.442695, %v804_v23 }
 0xf76   :  { %2393 = vpow2.f32 %v2022_v2 }
 0xf77   :  { %2395 = vtanh.f32 %v804_v23  ;;  %v484_v23 = vsel %vm483_vm8, %v2920_v15, 0.0 }
 0xf80   :  { %v2394_v3 = vpop.eup %2393 }
 0xf81   :  { %v809_v4 = vadd.f32 1.0, %v2394_v3  ;;  %v2396_v6 = vpop.eup %2395 }
 0xf83   :  { %2397 = vrcp.f32 %v809_v4 }
 0xf8d   :  { %v2398_v7 = vpop.eup %2397 }
 0xf8e   :  { %v812_v8 = vsel %vm2874_vm4, %v2396_v6, %v2398_v7 }
 0xf8f   :  { %815 = vrot.lane.b32.xlu0 %v812_v8, %s2658_s22  ;;  %v813_v16 = vmul.f32 %v812_v8, %v755_v12 }
 0xf93   :  { %833 = vperm.xlu0 %2332, %v831_v9  }
0x1001   :  { %v816_v10 = vpop.permute.xlu0 %815 }
0x1002   :  { %v818_v11 = vmul.f32 %v816_v10, %v812_v8 }
0x1004   :  { %820 = vrot.lane.b32.xlu1 %v818_v11, %s2665_s6 }
0x1012   :  { %v3037_v26 = vpop.permute.xlu0 %833 }
0x1013   :  { %vm835_vm2 = vcmp.eq.s32.totalorder %v3037_v26, 1 }
0x1076   :  { %v821_v18 = vpop.permute.xlu1 %820 }
0x1077   :  { %v823_v21 = vadd.f32 %v821_v18, %v813_v16  ;;  %v3102_v16 = vld [vmem:[#allocation11 + $0x8] sm:$0xff]   ;;  %v1131_v18 = vld [vmem:[#allocation6 + $0x8] sm:$0xff] }
0x1079   :  { %2399 = vtanh.f32 %v823_v21  ;;  %v3071_v49 = vsel %vm835_vm2, %v823_v21, %v755_v12  ;;  %v3097_v12 = vld [vmem:[#allocation11] sm:$0xff]  }
0x1083   :  { %v2400_v24 = vpop.eup %2399 }
0x1084   :  { %826 = vrot.lane.b32.xlu1 %v2400_v24, %s2658_s22  ;;  %v2033_v24 = vld [vmem:[%s3410_s2 + $0x8] sm:$0xff] }
0x10f6   :  { %v827_v27 = vpop.permute.xlu1 %826 }
0x10f7   :  { %v3039_v28 = vmul.f32 %v827_v27, %v812_v8  ;;  %v1132_v27 = vpack.c.bf16 %v2033_v24, %v2033_v24 }
0x10f9   :  { %v842_v29 = vsel %vm835_vm2, %v3039_v28, %v754_v57 }
0x10fa   :  { %v844_v30 = vpack.c.bf16 %v842_v29, %v842_v29 }
0x10fc   :  { %846 = vrot.lane.b32.xlu0 %v844_v30, %s2665_s6 }
0x116e   :  { %v847_v33 = vpop.permute.xlu0 %846 }
0x116f   :  { %2217 = vmatmul.mubr.msk.bf16.vlgmr.msra.gmra.mrb[20].mxu1 %vm305_vm1, %v847_v33 }
0x1170   :  { %2229 = vmatpush3.bf16.msra.mxu1 %v2347_v61 }
0x1171   :  { %2230 = vmatprep.subr.bf16.mxu1 %v2348_v62 }
0x1174   :  { %2231 = vmatpush3.bf16.msra.mxu1 %v2348_v62 }
0x1175   :  { %2256 = vmatprep.subr.bf16.mxu1 %v2662_v0 }
0x1242   :  { %v885_v34 = vpop.f32.mrb[20].mxu1 }
0x1243   :  { %v891_v35 = vadd.f32 %v2987_v22, %v885_v34  ;;  %v2218_v19 = vpop.f32.mrb[21].mxu1 }
0x1244   :  { %v888_v36 = vpop.f32.mrb[22].mxu1 }
0x1245   :  { %v892_v37 = vadd.f32 %v2867_v20, %v891_v35  ;;  %v2219_v38 = vpop.f32.mrb[23].mxu1 }
0x1247   :  { %v2024_v39 = vmul.f32 -1.442695, %v892_v37 }
0x1249   :  { %2401 = vpow2.f32 %v2024_v39  ;;  %v3134_v39 = vld [vmem:[%s3417_s9] ss:$0 sm:$0xff] }
0x124a   :  { %2403 = vtanh.f32 %v892_v37 }
0x1253   :  { %v2402_v40 = vpop.eup %2401 }
0x1254   :  { %v897_v41 = vadd.f32 1.0, %v2402_v40  ;;  %v2404_v43 = vpop.eup %2403 }
0x1256   :  { %2405 = vrcp.f32 %v897_v41 }
0x1260   :  { %v2406_v45 = vpop.eup %2405 }
0x1261   :  { %v900_v22 = vsel %vm2874_vm4, %v2404_v43, %v2406_v45 }
0x1262   :  { %903 = vrot.lane.b32.xlu1 %v900_v22, %s2658_s22  ;;  %v901_v47 = vmul.f32 %v900_v22, %v3071_v49 }
0x1266   :  { %921 = vperm.xlu1 %2331, %v919_v48  }
0x126a   :  { %394 = vrot.lane.b32.xlu1 %v392_v50, %s2665_s6 }
0x126e   :  { %574 = vrot.lane.b32.xlu1 %v572_v51, %s2665_s6 }
0x12d4   :  { %v904_v52 = vpop.permute.xlu1 %903 }
0x12d5   :  { %v906_v53 = vmul.f32 %v904_v52, %v900_v22 }
0x12d7   :  { %908 = vrot.lane.b32.xlu0 %v906_v53, %s2665_s6 }
0x12e5   :  { %v3065_v55 = vpop.permute.xlu1 %921 }
0x12e6   :  { %vm923_vm5 = vcmp.eq.s32.totalorder %v3065_v55, 1  ;;  %v2352_v55 = vld [vmem:[%s3418_s10 + $0x8] sm:$0xff]  }
0x12e9   :  { %v395_v57 = vpop.permute.xlu1 %394 }
0x12ea   :  { %397 = vst.msk [vmem:[#allocation2] sm:$0xff] %vm305_vm1, %v395_v57 }
0x12ed   :  { %v575_v58 = vpop.permute.xlu1 %574 }
0x12ee   :  { %577 = vst.msk [vmem:[#allocation2 + $0x10] sm:$0xff] %vm305_vm1, %v575_v58 }
0x12f1   :  { %v1027_v17 = vld [vmem:[#allocation2] sm:$0xff] }
0x12f5   :  { %v1029_v9 = vld [vmem:[#allocation2 + $0x10] sm:$0xff] }
0x1349   :  { %v909_v59 = vpop.permute.xlu0 %908 }
0x134a   :  { %v3074_v60 = vadd.f32 %v909_v59, %v901_v47 }
0x134c   :  { %2407 = vtanh.f32 %v3074_v60 }
0x1356   :  { %v2408_v63 = vpop.eup %2407 }
0x1357   :  { %914 = vrot.lane.b32.xlu0 %v2408_v63, %s2658_s22 }
0x135b   :  { %486 = vrot.lane.b32.xlu0 %v484_v23, %s2665_s6 }
0x135f   :  { %662 = vrot.lane.b32.xlu0 %v660_v1, %s2665_s6 }
0x13c9   :  { %v915_v2 = vpop.permute.xlu0 %914 }
0x13ca   :  { %v3087_v3 = vmul.f32 %v915_v2, %v900_v22 }
0x13cc   :  { %v930_v4 = vsel %vm923_vm5, %v3087_v3, %v842_v29 }
0x13cd   :  { %v487_v15 = vpop.permute.xlu0 %486  ;;  %v932_v5 = vpack.c.bf16 %v930_v4, %v930_v4 }
0x13ce   :  { %489 = vst.msk [vmem:[#allocation2 + $0x8] sm:$0xff] %vm305_vm1, %v487_v15 }
0x13cf   :  { %934 = vrot.lane.b32.xlu1 %v932_v5, %s2665_s6 }
0x13d1   :  { %v663_v6 = vpop.permute.xlu0 %662 }
0x13d2   :  { %665 = vst.msk [vmem:[#allocation2 + $0x18] sm:$0xff] %vm305_vm1, %v663_v6  ;;  %v118_v6 = vld [vmem:[%s3409_s1 + $0x38] sm:$0xff] }
0x13d3   :  { %1205 = vrot.lane.b32.xlu1 %v1131_v18, %s2665_s6  ;;  %vm1006_vm7 = vcmp.gt.f32.partialorder %v118_v6, 0.0 }
0x13d5   :  { %v1028_v7 = vld [vmem:[#allocation2 + $0x8] sm:$0xff] }
0x13d6   :  { %v1035_v8 = vpack.c.bf16 %v1028_v7, %v1027_v17 }
0x13d8   :  { %2232 = vmatprep.mubr.msk.bf16.mxu1 %vm305_vm1, %v1035_v8  ;;  %v1007_v8 = vsel %vm1006_vm7, 1, %v2664_v31 }
0x13d9   :  { %v1030_v10 = vld [vmem:[#allocation2 + $0x18] sm:$0xff] }
0x13da   :  { %v1036_v11 = vpack.c.bf16 %v1030_v10, %v1029_v9 }
0x13dc   :  { %2233 = vmatmul.mubr.msk.bf16.vlgmr.msra.gmra.mrb[24].mxu1 %vm305_vm1, %v1036_v11 }
0x13dd   :  { %2257 = vmatpush3.bf16.msra.mxu1 %v3097_v12 }
0x13de   :  { %2258 = vmatprep.subr.bf16.mxu1 %v2662_v0 }
0x13e1   :  { %2259 = vmatpush3.bf16.msra.mxu1 %v3102_v16 }
0x13e2   :  { %2272 = vmatprep.subr.bf16.mxu1 %v2662_v0 }
0x1441   :  { %v935_v21 = vpop.permute.xlu1 %934 }
0x1442   :  { %2225 = vmatmul.mubr.msk.bf16.vlgmr.msra.gmra.mrb[12].mxu0 %vm305_vm1, %v935_v21 }
0x1443   :  { %2241 = vmatpush3.bf16.msra.mxu0 %v3097_v12  ;;  %2244 = vmatprep.mubr.msk.bf16.mxu0 %vm2663_vm0, %v2662_v0 }
0x1444   :  { %2242 = vmatprep.subr.bf16.mxu0 %v2662_v0 }
0x1447   :  { %2243 = vmatpush3.bf16.msra.mxu0 %v3102_v16 }
0x1448   :  { %2248 = vmatprep.subr.bf16.mxu0 %v2662_v0 }
0x144a   :  { %2245 = vmatmul.mubr.msk.bf16.vlgmr.msra.gmra.mrb[16].mxu0 %vm305_vm1, %v1132_v27 }
0x144b   :  { %2249 = vmatpush3.bf16.msra.mxu0 %v3097_v12  ;;  %2252 = vmatprep.mubr.msk.bf16.mxu0 %vm2663_vm0, %v2662_v0 }
0x144c   :  { %2250 = vmatprep.subr.bf16.mxu0 %v2662_v0 }
0x144f   :  { %2251 = vmatpush3.bf16.msra.mxu0 %v3102_v16 }
0x1450   :  { %2264 = vmatprep.subr.bf16.mxu0 %v2662_v0 }
0x14af   :  { %v3124_v29 = vpop.f32.mrb[24].mxu1 }
0x14b0   :  { %v1097_v30 = vpop.f32.mrb[25].mxu1 }
0x14b1   :  { %v3126_v33 = vpop.f32.mrb[26].mxu1 }
0x14b2   :  { %v3128_v34 = vpop.f32.mrb[27].mxu1 }
0x1515   :  { %v973_v35 = vpop.f32.mrb[12].mxu0 }
0x1516   :  { %v979_v19 = vadd.f32 %v2989_v25, %v973_v35  ;;  %v2226_v36 = vpop.f32.mrb[13].mxu0 }
0x1517   :  { %v976_v37 = vpop.f32.mrb[14].mxu0 }
0x1518   :  { %v2227_v38 = vpop.f32.mrb[15].mxu0  ;;  %v980_v57 = vadd.f32 %v2867_v20, %v979_v19  ;;  %v1206_v20 = vpop.permute.xlu1 %1205 }
0x151a   :  { %v2026_v58 = vmul.f32 -1.442695, %v980_v57 }
0x151d   :  { %v1182_v40 = vpop.f32.mrb[16].mxu0 }
0x151e   :  { %v1188_v41 = vadd.f32 %v1182_v40, %v1097_v30  ;;  %v2246_v42 = vpop.f32.mrb[17].mxu0 }
0x151f   :  { %v1185_v43 = vpop.f32.mrb[18].mxu0 }
0x1520   :  { %v1195_v45 = vadd.f32 %v3134_v39, %v1188_v41  ;;  %v2247_v22 = vpop.f32.mrb[19].mxu0 }
0x1522   :  { %v2038_v48 = vmul.f32 -1.442695, %v1195_v45 }
0x1524   :  { %2409 = vpow2.f32 %v2038_v48 }
0x1525   :  { %2411 = vtanh.f32 %v1195_v45 }
0x152e   :  { %v2410_v50 = vpop.eup %2409 }
0x152f   :  { %v1200_v51 = vadd.f32 1.0, %v2410_v50  ;;  %v2412_v25 = vpop.eup %2411 }
0x1531   :  { %2413 = vrcp.f32 %v1200_v51 }
0x1532   :  { %2415 = vpow2.f32 %v2026_v58 }
0x153b   :  { %v2414_v52 = vpop.eup %2413 }
0x153c   :  { %v1203_v53 = vsel %vm2874_vm4, %v2412_v25, %v2414_v52  ;;  %v2416_v47 = vpop.eup %2415  ;;  %v748_v52 = vsel %vm747_vm14, %v3011_v56, 0.0 }
0x153d   :  { %1210 = vrot.lane.b32.xlu0 %v1203_v53, %s2658_s22  ;;  %v985_v59 = vadd.f32 1.0, %v2416_v47  ;;  %v1208_v2 = vmul.f32 %v1206_v20, %v1203_v53 }
0x153f   :  { %2417 = vrcp.f32 %v985_v59 }
0x1540   :  { %2419 = vtanh.f32 %v980_v57 }
0x1549   :  { %v2418_v63 = vpop.eup %2417 }
0x154a   :  { %v2420_v23 = vpop.eup %2419 }
0x154b   :  { %v3145_v1 = vsel %vm2874_vm4, %v2420_v23, %v2418_v63  ;;  %v836_v63 = vsel %vm835_vm2, %v3039_v28, 0.0 }
0x15af   :  { %v1211_v61 = vpop.permute.xlu0 %1210 }
0x15b0   :  { %v1213_v62 = vmul.f32 %v1211_v61, %v1203_v53 }
0x15b2   :  { %1215 = vrot.lane.b32.xlu0 %v1213_v62, %s2665_s6 }
0x15b6   :  { %1232 = vrot.lane.b32.xlu0 %v2033_v24, %s2666_s21 }
0x15ba   :  { %991 = vrot.lane.b32.xlu0 %v3145_v1, %s2658_s22 }
0x1624   :  { %v1216_v4 = vpop.permute.xlu0 %1215 }
0x1625   :  { %v1218_v15 = vadd.f32 %v1216_v4, %v1208_v2 }
0x1627   :  { %2421 = vtanh.f32 %v1218_v15 }
0x1628   :  { %v1233_v5 = vpop.permute.xlu0 %1232 }
0x162c   :  { %v992_v17 = vpop.permute.xlu0 %991 }
0x162d   :  { %v994_v7 = vmul.f32 %v992_v17, %v3145_v1 }
0x162f   :  { %996 = vrot.lane.b32.xlu0 %v994_v7, %s2665_s6 }
0x1631   :  { %v2422_v9 = vpop.eup %2421 }
0x1632   :  { %1221 = vrot.lane.b32.xlu1 %v2422_v9, %s2658_s22 }
0x1633   :  { %1009 = vperm.xlu0 %2332, %v1007_v8  }
0x16a1   :  { %v997_v45 = vpop.permute.xlu0 %996 }
0x16a4   :  { %v1222_v10 = vpop.permute.xlu1 %1221 }
0x16a5   :  { %v3156_v11 = vmul.f32 %v1222_v10, %v1203_v53 }
0x16a7   :  { %v1235_v18 = vsel %vm391_vm6, %v3156_v11, %v1233_v5 }
0x16a8   :  { %v1237_v21 = vpack.c.bf16 %v1235_v18, %v1235_v18 }
0x16aa   :  { %1239 = vrot.lane.b32.xlu1 %v1237_v21, %s2665_s6 }
0x171c   :  { %v1240_v24 = vpop.permute.xlu1 %1239 }
0x171d   :  { %2253 = vmatmul.mubr.msk.bf16.vlgmr.msra.gmra.mrb[20].mxu0 %vm305_vm1, %v1240_v24 }
0x171e   :  { %2265 = vmatpush3.bf16.msra.mxu0 %v3097_v12  ;;  %2268 = vmatprep.mubr.msk.bf16.mxu0 %vm2663_vm0, %v2662_v0 }
0x171f   :  { %2266 = vmatprep.subr.bf16.mxu0 %v2662_v0 }
0x1722   :  { %2267 = vmatpush3.bf16.msra.mxu0 %v3102_v16 }
0x1723   :  { %2280 = vmatprep.subr.bf16.mxu0 %v2662_v0 }
0x17f0   :  { %v1278_v31 = vpop.f32.mrb[20].mxu0 }
0x17f1   :  { %v1284_v27 = vadd.f32 %v1278_v31, %v3128_v34  ;;  %v2254_v30 = vpop.f32.mrb[21].mxu0  ;;  %v931_v34 = vsel %vm923_vm5, %v3074_v60, %v3071_v49  ;;  %v924_v49 = vsel %vm923_vm5, %v3087_v3, 0.0  ;;  %v3191_v60 = vsel %vm391_vm6, %v1218_v15, %v1206_v20  ;;  %v3200_v3 = vpop.permute.xlu0 %1009 }
0x17f2   :  { %v1281_v35 = vpop.f32.mrb[22].mxu0  ;;  %v989_v22 = vmul.f32 %v3145_v1, %v931_v34  ;;  %vm1011_vm9 = vcmp.eq.s32.totalorder %v3200_v3, 1 }
0x17f3   :  { %v1285_v19 = vadd.f32 %v3134_v39, %v1284_v27  ;;  %v2255_v36 = vpop.f32.mrb[23].mxu0 }
0x17f4   :  { %v999_v48 = vadd.f32 %v997_v45, %v989_v22 }
0x17f5   :  { %v2040_v37 = vmul.f32 -1.442695, %v1285_v19 }
0x17f7   :  { %2423 = vpow2.f32 %v2040_v37 }
0x17f8   :  { %2425 = vtanh.f32 %v1285_v19 }
0x1801   :  { %v2424_v38 = vpop.eup %2423 }
0x1802   :  { %v1290_v40 = vadd.f32 1.0, %v2424_v38  ;;  %v2426_v41 = vpop.eup %2425 }
0x1804   :  { %2427 = vrcp.f32 %v1290_v40 }
0x1805   :  { %2429 = vtanh.f32 %v999_v48 }
0x180e   :  { %v2428_v42 = vpop.eup %2427 }
0x180f   :  { %v1293_v43 = vsel %vm2874_vm4, %v2426_v41, %v2428_v42  ;;  %v2430_v25 = vpop.eup %2429 }
0x1810   :  { %1296 = vrot.lane.b32.xlu1 %v1293_v43, %s2658_s22  ;;  %v1294_v53 = vmul.f32 %v1293_v43, %v3191_v60 }
0x1882   :  { %v1297_v50 = vpop.permute.xlu1 %1296 }
0x1883   :  { %v1299_v51 = vmul.f32 %v1297_v50, %v1293_v43 }
0x1885   :  { %1301 = vrot.lane.b32.xlu1 %v1299_v51, %s2665_s6 }
0x1889   :  { %1002 = vrot.lane.b32.xlu1 %v2430_v25, %s2658_s22 }
0x188d   :  { %750 = vrot.lane.b32.xlu1 %v748_v52, %s2665_s6 }
0x1891   :  { %926 = vrot.lane.b32.xlu1 %v924_v49, %s2665_s6 }
0x18f7   :  { %v1302_v57 = vpop.permute.xlu1 %1301 }
0x18f8   :  { %v3194_v58 = vadd.f32 %v1302_v57, %v1294_v53 }
0x18fa   :  { %2431 = vtanh.f32 %v3194_v58  ;;  %v1318_v22 = vsel %vm483_vm8, %v3194_v58, %v3191_v60 }
0x18fb   :  { %v1003_v56 = vpop.permute.xlu1 %1002 }
0x18fc   :  { %v1005_v62 = vmul.f32 %v1003_v56, %v3145_v1 }
0x18fe   :  { %v1012_v23 = vsel %vm1011_vm9, %v1005_v62, 0.0 }
0x18ff   :  { %v751_v47 = vpop.permute.xlu1 %750 }
0x1900   :  { %753 = vst.msk [vmem:[#allocation2 + $0x20] sm:$0xff] %vm305_vm1, %v751_v47 }
0x1903   :  { %v927_v59 = vpop.permute.xlu1 %926 }
0x1904   :  { %v2432_v61 = vpop.eup %2431  ;;  %929 = vst.msk [vmem:[#allocation2 + $0x30] sm:$0xff] %vm305_vm1, %v927_v59 }
0x1905   :  { %1307 = vrot.lane.b32.xlu0 %v2432_v61, %s2658_s22 }
0x1907   :  { %v1031_v5 = vld [vmem:[#allocation2 + $0x20] sm:$0xff] }
0x1909   :  { %838 = vrot.lane.b32.xlu0 %v836_v63, %s2665_s6 }
0x190b   :  { %v1033_v7 = vld [vmem:[#allocation2 + $0x30] sm:$0xff] }
0x190d   :  { %1014 = vrot.lane.b32.xlu0 %v1012_v23, %s2665_s6 }
0x1977   :  { %v1308_v20 = vpop.permute.xlu0 %1307 }
0x1978   :  { %v3211_v2 = vmul.f32 %v1308_v20, %v1293_v43 }
0x197a   :  { %v1317_v1 = vsel %vm483_vm8, %v3211_v2, %v1235_v18 }
0x197b   :  { %v839_v4 = vpop.permute.xlu0 %838  ;;  %v1319_v15 = vpack.c.bf16 %v1317_v1, %v1317_v1 }
0x197c   :  { %841 = vst.msk [vmem:[#allocation2 + $0x28] sm:$0xff] %vm305_vm1, %v839_v4 }
0x197d   :  { %1321 = vrot.lane.b32.xlu1 %v1319_v15, %s2665_s6 }
0x197f   :  { %v1015_v28 = vpop.permute.xlu0 %1014 }
0x1980   :  { %1017 = vst.msk [vmem:[#allocation2 + $0x38] sm:$0xff] %vm305_vm1, %v1015_v28 }
0x1983   :  { %v1032_v6 = vld [vmem:[#allocation2 + $0x28] sm:$0xff] }
0x1984   :  { %v1037_v17 = vpack.c.bf16 %v1032_v6, %v1031_v5 }
0x1986   :  { %2236 = vmatprep.mubr.msk.bf16.mxu1 %vm305_vm1, %v1037_v17 }
0x1987   :  { %v1034_v8 = vld [vmem:[#allocation2 + $0x38] sm:$0xff] }
0x1988   :  { %v1038_v9 = vpack.c.bf16 %v1034_v8, %v1033_v7 }
0x198a   :  { %2237 = vmatmul.mubr.msk.bf16.gmra.mrb[28].mxu1 %vm305_vm1, %v1038_v9 }
0x198b   :  { %2260 = vmatprep.mubr.msk.bf16.mxu1 %vm2663_vm0, %v2662_v0 }
0x19ef   :  { %v1322_v10 = vpop.permute.xlu1 %1321 }
0x19f0   :  { %2261 = vmatmul.mubr.msk.bf16.vlgmr.msra.gmra.mrb[32].mxu1 %vm305_vm1, %v1322_v10 }
0x19f1   :  { %2273 = vmatpush3.bf16.msra.mxu1 %v3097_v12  ;;  %2276 = vmatprep.mubr.msk.bf16.mxu1 %vm2663_vm0, %v2662_v0 }
0x19f2   :  { %2274 = vmatprep.subr.bf16.mxu1 %v2662_v0 }
0x19f5   :  { %2275 = vmatpush3.bf16.msra.mxu1 %v3102_v16 }
0x19f6   :  { %2288 = vmatprep.subr.bf16.mxu1 %v2662_v0 }
0x1a5d   :  { %v3230_v18 = vpop.f32.mrb[28].mxu1 }
0x1a5e   :  { %v3232_v21 = vpop.f32.mrb[29].mxu1 }
0x1a5f   :  { %v3234_v24 = vpop.f32.mrb[30].mxu1 }
0x1a60   :  { %v3236_v31 = vpop.f32.mrb[31].mxu1 }
0x1ac3   :  { %v1360_v27 = vpop.f32.mrb[32].mxu1 }
0x1ac4   :  { %v1366_v30 = vadd.f32 %v3124_v29, %v1360_v27  ;;  %v2262_v35 = vpop.f32.mrb[33].mxu1 }
0x1ac5   :  { %v1363_v19 = vpop.f32.mrb[34].mxu1 }
0x1ac6   :  { %v1367_v36 = vadd.f32 %v3134_v39, %v1366_v30  ;;  %v2263_v37 = vpop.f32.mrb[35].mxu1 }
0x1ac8   :  { %v2042_v38 = vmul.f32 -1.442695, %v1367_v36 }
0x1aca   :  { %2433 = vpow2.f32 %v2042_v38 }
0x1acb   :  { %2435 = vtanh.f32 %v1367_v36 }
0x1ad4   :  { %v2434_v40 = vpop.eup %2433 }
0x1ad5   :  { %v1372_v41 = vadd.f32 1.0, %v2434_v40  ;;  %v2436_v42 = vpop.eup %2435 }
0x1ad7   :  { %2437 = vrcp.f32 %v1372_v41 }
0x1ae1   :  { %v2438_v43 = vpop.eup %2437 }
0x1ae2   :  { %v1375_v34 = vsel %vm2874_vm4, %v2436_v42, %v2438_v43 }
0x1ae3   :  { %1378 = vrot.lane.b32.xlu0 %v1375_v34, %s2658_s22  ;;  %v1376_v48 = vmul.f32 %v1375_v34, %v1318_v22 }
0x1b55   :  { %v1379_v45 = vpop.permute.xlu0 %1378 }
0x1b56   :  { %v1381_v29 = vmul.f32 %v1379_v45, %v1375_v34 }
0x1b58   :  { %1383 = vrot.lane.b32.xlu1 %v1381_v29, %s2665_s6 }
0x1bca   :  { %v1384_v50 = vpop.permute.xlu1 %1383 }
0x1bcb   :  { %v1386_v51 = vadd.f32 %v1384_v50, %v1376_v48 }
0x1bcd   :  { %2439 = vtanh.f32 %v1386_v51  ;;  %v1400_v5 = vsel %vm571_vm10, %v1386_v51, %v1318_v22 }
0x1bd7   :  { %v2440_v25 = vpop.eup %2439 }
0x1bd8   :  { %1389 = vrot.lane.b32.xlu0 %v2440_v25, %s2658_s22 }
0x1c4a   :  { %v1390_v52 = vpop.permute.xlu0 %1389 }
0x1c4b   :  { %v3249_v49 = vmul.f32 %v1390_v52, %v1375_v34 }
0x1c4d   :  { %v1399_v53 = vsel %vm571_vm10, %v3249_v49, %v1317_v1 }
0x1c4e   :  { %v1401_v57 = vpack.c.bf16 %v1399_v53, %v1399_v53 }
0x1c50   :  { %1403 = vrot.lane.b32.xlu1 %v1401_v57, %s2665_s6 }
0x1cc2   :  { %v1404_v56 = vpop.permute.xlu1 %1403 }
0x1cc3   :  { %2269 = vmatmul.mubr.msk.bf16.vlgmr.msra.gmra.mrb[24].mxu0 %vm305_vm1, %v1404_v56 }
0x1cc4   :  { %2281 = vmatpush3.bf16.msra.mxu0 %v3097_v12  ;;  %2284 = vmatprep.mubr.msk.bf16.mxu0 %vm2663_vm0, %v2662_v0 }
0x1cc5   :  { %2282 = vmatprep.subr.bf16.mxu0 %v2662_v0 }
0x1cc8   :  { %2283 = vmatpush3.bf16.msra.mxu0 %v3102_v16 }
0x1cc9   :  { %2296 = vmatprep.subr.bf16.mxu0 %v2662_v0 }
0x1d96   :  { %v1442_v60 = vpop.f32.mrb[24].mxu0 }
0x1d97   :  { %v1448_v58 = vadd.f32 %v3126_v33, %v1442_v60  ;;  %v2270_v47 = vpop.f32.mrb[25].mxu0 }
0x1d98   :  { %v1445_v59 = vpop.f32.mrb[26].mxu0 }
0x1d99   :  { %v1449_v61 = vadd.f32 %v3134_v39, %v1448_v58  ;;  %v2271_v62 = vpop.f32.mrb[27].mxu0 }
0x1d9b   :  { %v2044_v63 = vmul.f32 -1.442695, %v1449_v61 }
0x1d9d   :  { %2441 = vpow2.f32 %v2044_v63 }
0x1d9e   :  { %2443 = vtanh.f32 %v1449_v61 }
0x1da7   :  { %v2442_v23 = vpop.eup %2441 }
0x1da8   :  { %v1454_v20 = vadd.f32 1.0, %v2442_v23  ;;  %v2444_v1 = vpop.eup %2443 }
0x1daa   :  { %2445 = vrcp.f32 %v1454_v20 }
0x1db4   :  { %v2446_v4 = vpop.eup %2445 }
0x1db5   :  { %v1457_v15 = vsel %vm2874_vm4, %v2444_v1, %v2446_v4 }
0x1db6   :  { %1460 = vrot.lane.b32.xlu0 %v1457_v15, %s2658_s22  ;;  %v1458_v6 = vmul.f32 %v1457_v15, %v1400_v5 }
0x1e28   :  { %v1461_v28 = vpop.permute.xlu0 %1460 }
0x1e29   :  { %v1463_v33 = vmul.f32 %v1461_v28, %v1457_v15 }
0x1e2b   :  { %1465 = vrot.lane.b32.xlu1 %v1463_v33, %s2665_s6 }
0x1e9d   :  { %v1466_v17 = vpop.permute.xlu1 %1465 }
0x1e9e   :  { %v1468_v7 = vadd.f32 %v1466_v17, %v1458_v6 }
0x1ea0   :  { %2447 = vtanh.f32 %v1468_v7  ;;  %v1482_v50 = vsel %vm659_vm12, %v1468_v7, %v1400_v5 }
0x1eaa   :  { %v2448_v8 = vpop.eup %2447 }
0x1eab   :  { %1471 = vrot.lane.b32.xlu0 %v2448_v8, %s2658_s22 }
0x1f1d   :  { %v1472_v9 = vpop.permute.xlu0 %1471 }
0x1f1e   :  { %v3271_v10 = vmul.f32 %v1472_v9, %v1457_v15 }
0x1f20   :  { %v1481_v27 = vsel %vm659_vm12, %v3271_v10, %v1399_v53 }
0x1f21   :  { %v1483_v30 = vpack.c.bf16 %v1481_v27, %v1481_v27 }
0x1f23   :  { %1485 = vrot.lane.b32.xlu1 %v1483_v30, %s2665_s6 }
0x1f95   :  { %v1486_v35 = vpop.permute.xlu1 %1485 }
0x1f96   :  { %2277 = vmatmul.mubr.msk.bf16.vlgmr.msra.gmra.mrb[36].mxu1 %vm305_vm1, %v1486_v35 }
0x1f97   :  { %2289 = vmatpush3.bf16.msra.mxu1 %v3097_v12  ;;  %2292 = vmatprep.mubr.msk.bf16.mxu1 %vm2663_vm0, %v2662_v0 }
0x1f98   :  { %2290 = vmatprep.subr.bf16.mxu1 %v2662_v0 }
0x1f9b   :  { %2291 = vmatpush3.bf16.msra.mxu1 %v3102_v16 }
0x1f9c   :  { %2304 = vmatprep.subr.bf16.mxu1 %v2351_v54 }
0x2069   :  { %v1524_v19 = vpop.f32.mrb[36].mxu1 }
0x206a   :  { %v1530_v36 = vadd.f32 %v1524_v19, %v3232_v21  ;;  %v2278_v37 = vpop.f32.mrb[37].mxu1 }
0x206b   :  { %v1527_v38 = vpop.f32.mrb[38].mxu1 }
0x206c   :  { %v1531_v40 = vadd.f32 %v3134_v39, %v1530_v36  ;;  %v2279_v41 = vpop.f32.mrb[39].mxu1 }
0x206e   :  { %v2046_v42 = vmul.f32 -1.442695, %v1531_v40 }
0x2070   :  { %2449 = vpow2.f32 %v2046_v42 }
0x2071   :  { %2451 = vtanh.f32 %v1531_v40 }
0x207a   :  { %v2450_v43 = vpop.eup %2449 }
0x207b   :  { %v1536_v34 = vadd.f32 1.0, %v2450_v43  ;;  %v2452_v45 = vpop.eup %2451 }
0x207d   :  { %2453 = vrcp.f32 %v1536_v34 }
0x2087   :  { %v2454_v29 = vpop.eup %2453 }
0x2088   :  { %v1539_v22 = vsel %vm2874_vm4, %v2452_v45, %v2454_v29 }
0x2089   :  { %1542 = vrot.lane.b32.xlu0 %v1539_v22, %s2658_s22  ;;  %v1540_v51 = vmul.f32 %v1539_v22, %v1482_v50 }
0x20fb   :  { %v1543_v48 = vpop.permute.xlu0 %1542 }
0x20fc   :  { %v1545_v21 = vmul.f32 %v1543_v48, %v1539_v22 }
0x20fe   :  { %1547 = vrot.lane.b32.xlu1 %v1545_v21, %s2665_s6 }
0x2170   :  { %v1548_v25 = vpop.permute.xlu1 %1547 }
0x2171   :  { %v1550_v52 = vadd.f32 %v1548_v25, %v1540_v51 }
0x2173   :  { %2455 = vtanh.f32 %v1550_v52  ;;  %v1564_v33 = vsel %vm747_vm14, %v1550_v52, %v1482_v50 }
0x217d   :  { %v2456_v53 = vpop.eup %2455 }
0x217e   :  { %1553 = vrot.lane.b32.xlu0 %v2456_v53, %s2658_s22 }
0x21f0   :  { %v1554_v57 = vpop.permute.xlu0 %1553 }
0x21f1   :  { %v3292_v56 = vmul.f32 %v1554_v57, %v1539_v22 }
0x21f3   :  { %v1563_v60 = vsel %vm747_vm14, %v3292_v56, %v1481_v27  ;;  %v1557_v32 = vsel %vm747_vm14, %v3292_v56, 0.0 }
0x21f4   :  { %v1565_v58 = vpack.c.bf16 %v1563_v60, %v1563_v60 }
0x21f6   :  { %1567 = vrot.lane.b32.xlu1 %v1565_v58, %s2665_s6 }
0x2268   :  { %v1568_v47 = vpop.permute.xlu1 %1567 }
0x2269   :  { %2285 = vmatmul.mubr.msk.bf16.vlgmr.msra.gmra.mrb[28].mxu0 %vm305_vm1, %v1568_v47 }
0x226a   :  { %2297 = vmatpush3.bf16.msra.mxu0 %v3097_v12  ;;  %2300 = vmatprep.mubr.msk.bf16.mxu0 %vm2663_vm0, %v2662_v0 }
0x226b   :  { %2298 = vmatprep.subr.bf16.mxu0 %v2662_v0 }
0x226e   :  { %2299 = vmatpush3.bf16.msra.mxu0 %v3102_v16 }
0x233c   :  { %v1606_v59 = vpop.f32.mrb[28].mxu0 }
0x233d   :  { %v1612_v61 = vadd.f32 %v1606_v59, %v3236_v31  ;;  %v2286_v62 = vpop.f32.mrb[29].mxu0 }
0x233e   :  { %v1609_v63 = vpop.f32.mrb[30].mxu0 }
0x233f   :  { %v1613_v23 = vadd.f32 %v3134_v39, %v1612_v61  ;;  %v2287_v20 = vpop.f32.mrb[31].mxu0 }
0x2341   :  { %v2048_v1 = vmul.f32 -1.442695, %v1613_v23 }
0x2343   :  { %2457 = vpow2.f32 %v2048_v1 }
0x2344   :  { %2459 = vtanh.f32 %v1613_v23 }
0x234d   :  { %v2458_v4 = vpop.eup %2457 }
0x234e   :  { %v1618_v15 = vadd.f32 1.0, %v2458_v4  ;;  %v2460_v12 = vpop.eup %2459 }
0x2350   :  { %2461 = vrcp.f32 %v1618_v15 }
0x235a   :  { %v2462_v28 = vpop.eup %2461 }
0x235b   :  { %v1621_v0 = vsel %vm2874_vm4, %v2460_v12, %v2462_v28 }
0x235c   :  { %1624 = vrot.lane.b32.xlu0 %v1621_v0, %s2658_s22  ;;  %v1622_v5 = vmul.f32 %v1621_v0, %v1564_v33 }
0x23ce   :  { %v1625_v16 = vpop.permute.xlu0 %1624 }
0x23cf   :  { %v1627_v31 = vmul.f32 %v1625_v16, %v1621_v0 }
0x23d1   :  { %1629 = vrot.lane.b32.xlu1 %v1627_v31, %s2665_s6  ;;  %v1393_v31 = vsel %vm571_vm10, %v3249_v49, 0.0 }
0x2443   :  { %v1630_v6 = vpop.permute.xlu1 %1629 }
0x2444   :  { %v1632_v17 = vadd.f32 %v1630_v6, %v1622_v5 }
0x2446   :  { %2463 = vtanh.f32 %v1632_v17  ;;  %v1646_v21 = vsel %vm835_vm2, %v1632_v17, %v1564_v33 }
0x2450   :  { %v2464_v7 = vpop.eup %2463 }
0x2451   :  { %1635 = vrot.lane.b32.xlu0 %v2464_v7, %s2658_s22 }
0x24c3   :  { %v1636_v8 = vpop.permute.xlu0 %1635 }
0x24c4   :  { %v3313_v9 = vmul.f32 %v1636_v8, %v1621_v0  ;;  %v1311_v8 = vsel %vm483_vm8, %v3211_v2, 0.0 }
0x24c6   :  { %v1645_v27 = vsel %vm835_vm2, %v3313_v9, %v1563_v60 }
0x24c7   :  { %v1647_v30 = vpack.c.bf16 %v1645_v27, %v1645_v27 }
0x24c9   :  { %1649 = vrot.lane.b32.xlu1 %v1647_v30, %s2665_s6  ;;  %v1639_v30 = vsel %vm835_vm2, %v3313_v9, 0.0 }
0x253b   :  { %v1650_v35 = vpop.permute.xlu1 %1649 }
0x253c   :  { %2293 = vmatmul.mubr.msk.bf16.vlgmr.msra.gmra.mrb[40].mxu1 %vm305_vm1, %v1650_v35 }
0x253d   :  { %2305 = vmatpush3.bf16.msra.mxu1 %v2351_v54 }
0x253e   :  { %2306 = vmatprep.subr.bf16.mxu1 %v2352_v55 }
0x2541   :  { %2307 = vmatpush3.bf16.msra.mxu1 %v2352_v55 }
0x260f   :  { %v1688_v19 = vpop.f32.mrb[40].mxu1 }
0x2610   :  { %v1694_v36 = vadd.f32 %v3230_v18, %v1688_v19  ;;  %v2294_v37 = vpop.f32.mrb[41].mxu1 }
0x2611   :  { %v1691_v38 = vpop.f32.mrb[42].mxu1 }
0x2612   :  { %v1695_v40 = vadd.f32 %v3134_v39, %v1694_v36  ;;  %v2295_v41 = vpop.f32.mrb[43].mxu1 }
0x2614   :  { %v2050_v42 = vmul.f32 -1.442695, %v1695_v40 }
0x2616   :  { %2465 = vpow2.f32 %v2050_v42 }
0x2617   :  { %2467 = vtanh.f32 %v1695_v40 }
0x2620   :  { %v2466_v43 = vpop.eup %2465 }
0x2621   :  { %v1700_v34 = vadd.f32 1.0, %v2466_v43  ;;  %v2468_v45 = vpop.eup %2467 }
0x2623   :  { %2469 = vrcp.f32 %v1700_v34 }
0x262d   :  { %v2470_v29 = vpop.eup %2469 }
0x262e   :  { %v1703_v22 = vsel %vm2874_vm4, %v2468_v45, %v2470_v29 }
0x262f   :  { %1706 = vrot.lane.b32.xlu0 %v1703_v22, %s2658_s22  ;;  %v1704_v50 = vmul.f32 %v1703_v22, %v1646_v21 }
0x26a1   :  { %v1707_v48 = vpop.permute.xlu0 %1706 }
0x26a2   :  { %v1709_v18 = vmul.f32 %v1707_v48, %v1703_v22 }
0x26a4   :  { %1711 = vrot.lane.b32.xlu1 %v1709_v18, %s2665_s6 }
0x2716   :  { %v1712_v51 = vpop.permute.xlu1 %1711 }
0x2717   :  { %v1714_v25 = vadd.f32 %v1712_v51, %v1704_v50 }
0x2719   :  { %2471 = vtanh.f32 %v1714_v25  ;;  %v1728_v46 = vsel %vm923_vm5, %v1714_v25, %v1646_v21 }
0x2723   :  { %v2472_v52 = vpop.eup %2471 }
0x2724   :  { %1717 = vrot.lane.b32.xlu0 %v2472_v52, %s2658_s22 }
0x2796   :  { %v1718_v53 = vpop.permute.xlu0 %1717 }
0x2797   :  { %v1720_v57 = vmul.f32 %v1718_v53, %v1703_v22  ;;  %v2053_v22 = vld [vmem:[%s3419_s11] ss:$0 sm:$0xff]  ;;  %s2667_s11 = smov [#allocation12]  }
0x2799   :  { %v1727_v60 = vsel %vm923_vm5, %v1720_v57, %v1645_v27  ;;  %v1721_v33 = vsel %vm923_vm5, %v1720_v57, 0.0  ;;  %v1475_v27 = vsel %vm659_vm12, %v3271_v10, 0.0 }
0x279a   :  { %v1729_v58 = vpack.c.bf16 %v1727_v60, %v1727_v60 }
0x279c   :  { %1731 = vrot.lane.b32.xlu1 %v1729_v58, %s2665_s6 }
0x280e   :  { %v1732_v47 = vpop.permute.xlu1 %1731 }
0x280f   :  { %2301 = vmatmul.mubr.msk.bf16.vlgmr.msra.gmra.mrb[32].mxu0 %vm305_vm1, %v1732_v47 }
0x28e2   :  { %v1770_v59 = vpop.f32.mrb[32].mxu0 }
0x28e3   :  { %v1776_v61 = vadd.f32 %v3234_v24, %v1770_v59  ;;  %v2302_v62 = vpop.f32.mrb[33].mxu0 }
0x28e4   :  { %v1773_v63 = vpop.f32.mrb[34].mxu0 }
0x28e5   :  { %v1777_v23 = vadd.f32 %v3134_v39, %v1776_v61  ;;  %v2303_v20 = vpop.f32.mrb[35].mxu0  ;;  %v1225_v39 = vsel %vm391_vm6, %v3156_v11, 0.0 }
0x28e7   :  { %v2052_v1 = vmul.f32 -1.442695, %v1777_v23 }
0x28e9   :  { %2473 = vpow2.f32 %v2052_v1 }
0x28ea   :  { %2475 = vtanh.f32 %v1777_v23 }
0x28f3   :  { %v2474_v4 = vpop.eup %2473 }
0x28f4   :  { %v1782_v15 = vadd.f32 1.0, %v2474_v4  ;;  %v2476_v12 = vpop.eup %2475 }
0x28f6   :  { %2477 = vrcp.f32 %v1782_v15 }
0x2900   :  { %v2478_v28 = vpop.eup %2477 }
0x2901   :  { %v1785_v0 = vsel %vm2874_vm4, %v2476_v12, %v2478_v28 }
0x2902   :  { %1788 = vrot.lane.b32.xlu0 %v1785_v0, %s2658_s22  ;;  %v1786_v11 = vmul.f32 %v1785_v0, %v1728_v46 }
0x2974   :  { %v1789_v16 = vpop.permute.xlu0 %1788 }
0x2975   :  { %v1791_v24 = vmul.f32 %v1789_v16, %v1785_v0 }
0x2977   :  { %1793 = vrot.lane.b32.xlu1 %v1791_v24, %s2665_s6 }
0x297b   :  { %1227 = vrot.lane.b32.xlu1 %v1225_v39, %s2665_s6 }
0x297f   :  { %1395 = vrot.lane.b32.xlu1 %v1393_v31, %s2665_s6 }
0x2983   :  { %1559 = vrot.lane.b32.xlu1 %v1557_v32, %s2665_s6 }
0x2987   :  { %1723 = vrot.lane.b32.xlu1 %v1721_v33, %s2665_s6 }
0x29e9   :  { %v1794_v5 = vpop.permute.xlu1 %1793 }
0x29ea   :  { %v1796_v44 = vadd.f32 %v1794_v5, %v1786_v11 }
0x29ec   :  { %2479 = vtanh.f32 %v1796_v44 }
0x29ed   :  { %v1228_v49 = vpop.permute.xlu1 %1227 }
0x29ee   :  { %1230 = vst.msk [vmem:[#allocation2] sm:$0xff] %vm305_vm1, %v1228_v49 }
0x29f1   :  { %v1396_v6 = vpop.permute.xlu1 %1395 }
0x29f2   :  { %1398 = vst.msk [vmem:[#allocation2 + $0x10] sm:$0xff] %vm305_vm1, %v1396_v6 }
0x29f5   :  { %v1560_v56 = vpop.permute.xlu1 %1559  ;;  %v1809_v36 = vld [vmem:[#allocation2] sm:$0xff] }
0x29f6   :  { %v2480_v17 = vpop.eup %2479  ;;  %1562 = vst.msk [vmem:[#allocation2 + $0x20] sm:$0xff] %vm305_vm1, %v1560_v56 }
0x29f7   :  { %1799 = vrot.lane.b32.xlu0 %v2480_v17, %s2658_s22 }
0x29f9   :  { %v1724_v7 = vpop.permute.xlu1 %1723  ;;  %v1811_v9 = vld [vmem:[#allocation2 + $0x10] sm:$0xff] }
0x29fa   :  { %1726 = vst.msk [vmem:[#allocation2 + $0x30] sm:$0xff] %vm305_vm1, %v1724_v7 }
0x29fb   :  { %1313 = vrot.lane.b32.xlu0 %v1311_v8, %s2665_s6 }
0x29fd   :  { %v1813_v40 = vld [vmem:[#allocation2 + $0x20] sm:$0xff] }
0x29ff   :  { %1477 = vrot.lane.b32.xlu0 %v1475_v27, %s2665_s6 }
0x2a01   :  { %v1815_v34 = vld [vmem:[#allocation2 + $0x30] sm:$0xff] }
0x2a03   :  { %1641 = vrot.lane.b32.xlu0 %v1639_v30, %s2665_s6 }
0x2a69   :  { %v1800_v35 = vpop.permute.xlu0 %1799 }
0x2a6a   :  { %v1802_v19 = vmul.f32 %v1800_v35, %v1785_v0 }
0x2a6c   :  { %v1803_v13 = vsel %vm1011_vm9, %v1802_v19, 0.0 }
0x2a6d   :  { %1805 = vrot.lane.b32.xlu0 %v1803_v13, %s2665_s6  ;;  %v1314_v2 = vpop.permute.xlu0 %1313  ;;  %s1982_s6 = sshll.u32 %s2667_s11, 4  ;;  %s1983_s6 = int_to_ptr.vmem [resolvable:$true] %s1982_s6 }
0x2a6e   :  { %1316 = vst.msk [vmem:[#allocation2 + $0x8] sm:$0xff] %vm305_vm1, %v1314_v2  ;;  %s2623_s19 = scalar_lea.vmem %s1983_s6, 1024  ;;  %p2628_p13 = scmp.lt.s32.totalorder %s1983_s6, %s1983_s6 }
0x2a6f   :  { %p2624_p12 = scmp.ne.s32.totalorder %s1983_s6, %s2623_s19  ;;  %p2629_p0 = scmp.lt.s32.totalorder %s2623_s19, %s2623_s19 }
0x2a71   :  { %v1478_v14 = vpop.permute.xlu0 %1477  ;;  %p2630_p1 = por %p2629_p0, %p2628_p13 }
0x2a72   :  { %1480 = vst.msk [vmem:[#allocation2 + $0x18] sm:$0xff] %vm305_vm1, %v1478_v14 }
0x2a73   :  { %p2631_p2 = pnand %p2630_p1, %p2624_p12 }
0x2a75   :  { %v1642_v10 = vpop.permute.xlu0 %1641  ;;  %v1810_v37 = vld [vmem:[#allocation2 + $0x8] sm:$0xff] }
0x2a76   :  { %1644 = vst.msk [vmem:[#allocation2 + $0x28] sm:$0xff] %vm305_vm1, %v1642_v10  ;;  %v1817_v26 = vpack.c.bf16 %v1810_v37, %v1809_v36 }
0x2a78   :  { %2308 = vmatprep.mubr.msk.bf16.mxu1 %vm305_vm1, %v1817_v26 }
0x2a79   :  { %v1812_v38 = vld [vmem:[#allocation2 + $0x18] sm:$0xff] }
0x2a7a   :  { %v1818_v3 = vpack.c.bf16 %v1812_v38, %v1811_v9 }
0x2a7c   :  { %2309 = vmatmul.mubr.msk.bf16.vlgmr.msra.gmra.mrb[44].mxu1 %vm305_vm1, %v1818_v3 }
0x2a7d   :  { %v1814_v41 = vld [vmem:[#allocation2 + $0x28] sm:$0xff] }
0x2a7e   :  { %v1819_v42 = vpack.c.bf16 %v1814_v41, %v1813_v40 }
0x2a80   :  { %2312 = vmatprep.mubr.msk.bf16.mxu1 %vm305_vm1, %v1819_v42 }
0x2adf   :  { %v1806_v43 = vpop.permute.xlu0 %1805 }
0x2ae0   :  { %1808 = vst.msk [vmem:[#allocation2 + $0x38] sm:$0xff] %vm305_vm1, %v1806_v43 }
0x2ae7   :  { %v1816_v45 = vld [vmem:[#allocation2 + $0x38] sm:$0xff] }
0x2ae8   :  { %v1820_v29 = vpack.c.bf16 %v1816_v45, %v1815_v34 }
0x2aea   :  { %2313 = vmatmul.mubr.msk.bf16.gmra.mrb[48].mxu1 %vm305_vm1, %v1820_v29 }
0x2b4f   :  { %v2310_v48 = vpop.f32.mrb[44].mxu1 }
0x2b50   :  { %v1899_v18 = vadd.f32 %v2310_v48, %v2053_v22  ;;  %v1890_v21 = vpop.f32.mrb[45].mxu1 }
0x2b51   :  { %v1891_v50 = vadd.f32 %v2053_v22, %v1890_v21  ;;  %v2311_v51 = vpop.f32.mrb[46].mxu1 }
0x2b52   :  { %v2062_v25 = vmul.f32 -1.442695, %v1899_v18  ;;  %v1902_v52 = vadd.f32 %v2311_v51, %v2053_v22  ;;  %v1893_v53 = vpop.f32.mrb[47].mxu1 }
0x2b53   :  { %v2060_v57 = vmul.f32 -1.442695, %v1891_v50  ;;  %v1894_v60 = vadd.f32 %v2053_v22, %v1893_v53 }
0x2b54   :  { %2481 = vpow2.f32 %v2062_v25  ;;  %v2063_v58 = vmul.f32 -1.442695, %v1902_v52 }
0x2b55   :  { %2483 = vpow2.f32 %v2060_v57  ;;  %v2061_v47 = vmul.f32 -1.442695, %v1894_v60 }
0x2b56   :  { %2485 = vpow2.f32 %v2063_v58 }
0x2b57   :  { %2487 = vpow2.f32 %v2061_v47 }
0x2b5e   :  { %v2482_v59 = vpop.eup %2481 }
0x2b5f   :  { %v2484_v61 = vpop.eup %2483  ;;  %v1947_v62 = vadd.f32 1.0, %v2482_v59 }
0x2b60   :  { %v2486_v63 = vpop.eup %2485  ;;  %v1945_v23 = vadd.f32 1.0, %v2484_v61 }
0x2b61   :  { %v2488_v20 = vpop.eup %2487  ;;  %2489 = vrcp.f32 %v1947_v62  ;;  %v1948_v1 = vadd.f32 1.0, %v2486_v63 }
0x2b62   :  { %2491 = vrcp.f32 %v1945_v23  ;;  %v1946_v4 = vadd.f32 1.0, %v2488_v20 }
0x2b63   :  { %2493 = vrcp.f32 %v1948_v1 }
0x2b64   :  { %2495 = vrcp.f32 %v1946_v4 }
0x2b6b   :  { %v2490_v15 = vpop.eup %2489 }
0x2b6c   :  { %v2492_v12 = vpop.eup %2491  ;;  %1971 = vst [vmem:[#allocation12 + $0x10] sm:$0xff] %v2490_v15 }
0x2b6d   :  { %v2494_v28 = vpop.eup %2493  ;;  %1969 = vst [vmem:[#allocation12] sm:$0xff] %v2492_v12 }
0x2b6e   :  { %v2496_v0 = vpop.eup %2495  ;;  %1972 = vst [vmem:[#allocation12 + $0x18] sm:$0xff] %v2494_v28 }
0x2b6f   :  { %1970 = vst [vmem:[#allocation12 + $0x8] sm:$0xff] %v2496_v0 }
0x2bbd   :  { %v2314_v16 = vpop.f32.mrb[48].mxu1 }
0x2bbe   :  { %v1915_v24 = vadd.f32 %v2314_v16, %v2053_v22  ;;  %v1906_v39 = vpop.f32.mrb[49].mxu1 }
0x2bbf   :  { %v1907_v31 = vadd.f32 %v2053_v22, %v1906_v39  ;;  %v2315_v32 = vpop.f32.mrb[50].mxu1 }
0x2bc0   :  { %v2066_v33 = vmul.f32 -1.442695, %v1915_v24  ;;  %v1918_v46 = vadd.f32 %v2315_v32, %v2053_v22  ;;  %v1909_v11 = vpop.f32.mrb[51].mxu1 }
0x2bc1   :  { %v2064_v5 = vmul.f32 -1.442695, %v1907_v31  ;;  %v1910_v44 = vadd.f32 %v2053_v22, %v1909_v11 }
0x2bc2   :  { %2497 = vpow2.f32 %v2066_v33  ;;  %v2067_v49 = vmul.f32 -1.442695, %v1918_v46 }
0x2bc3   :  { %2499 = vpow2.f32 %v2064_v5  ;;  %v2065_v6 = vmul.f32 -1.442695, %v1910_v44 }
0x2bc4   :  { %2501 = vpow2.f32 %v2067_v49 }
0x2bc5   :  { %2503 = vpow2.f32 %v2065_v6 }
0x2bcc   :  { %v2498_v54 = vpop.eup %2497 }
0x2bcd   :  { %v2500_v56 = vpop.eup %2499  ;;  %v1951_v17 = vadd.f32 1.0, %v2498_v54 }
0x2bce   :  { %v2502_v55 = vpop.eup %2501  ;;  %v1949_v7 = vadd.f32 1.0, %v2500_v56 }
0x2bcf   :  { %v2504_v8 = vpop.eup %2503  ;;  %2505 = vrcp.f32 %v1951_v17  ;;  %v1952_v27 = vadd.f32 1.0, %v2502_v55 }
0x2bd0   :  { %2507 = vrcp.f32 %v1949_v7  ;;  %v1950_v30 = vadd.f32 1.0, %v2504_v8 }
0x2bd1   :  { %2509 = vrcp.f32 %v1952_v27 }
0x2bd2   :  { %2511 = vrcp.f32 %v1950_v30 }
0x2bd9   :  { %v2506_v35 = vpop.eup %2505 }
0x2bda   :  { %v2508_v19 = vpop.eup %2507  ;;  %1975 = vst [vmem:[#allocation12 + $0x30] sm:$0xff] %v2506_v35 }
0x2bdb   :  { %v2510_v13 = vpop.eup %2509  ;;  %1973 = vst [vmem:[#allocation12 + $0x20] sm:$0xff] %v2508_v19 }
0x2bdc   :  { %v2512_v2 = vpop.eup %2511  ;;  %1976 = vst [vmem:[#allocation12 + $0x38] sm:$0xff] %v2510_v13 }
0x2bdd   :  { %1974 = vst [vmem:[#allocation12 + $0x28] sm:$0xff] %v2512_v2 }
0x2bde   :  { %2634 = shalt.err (!%p2631_p2)
}
0x2bdf   :  { %s2635_s24 = scalar_lea.hbm %s3420_s12, 1024 }
0x2be0   :  { %p2636_p3 = scmp.ne.s32.totalorder %s3420_s12, %s2635_s24  ;;  %p2639_p4 = scmp.lt.u32.totalorder %s2635_s24, %s3420_s12 }
0x2be2   :  { %p2641_p5 = pnand %p2639_p4, %p2636_p3 }
0x2be4   :  { %2644 = shalt.err (!%p2641_p5)
}
0x2be5   :  { %1988 = dma.vmem_to_hbm [thread:$0]  %s1983_s6, 1024, %s3420_s12, [#allocation5], %s2654_s13, %s2654_s13, %s2655_s14  }
0x2be6   :  { %2651 = dma.done.wait [#allocation5], 1024  }
0x2be7   :  { %2652 = vsyncadd [#allocation5], 4294966272 }
0x2be8   :  { %1992 = vsyncpa [#allocation4], 1 }
0x2be9   :  { %1993 = vsyncpa [#allocation7], 1 }
0x2bea   :  { %1994 = vsyncpa [#allocation10], 1 }
0x2beb   :  { %1995 = vsyncpa [#allocation5], 1 }

</bundles_post_ra>
